<compile_context>
chip_gen: v7x
topology: tpu7x:2x2x1
jax: 0.10.0
libtpu: 0.0.40
codegen_flags: <defaults>
</compile_context>

<pallas_src>
import functools

import jax
import jax.numpy as jnp
from jax import lax
from jax.experimental import pallas as pl
from jax.experimental.pallas import tpu as pltpu


def _round_up(x, m):
    return (x + m - 1) // m * m


def gru_session_kernel(gi_ref, h0_ref, whh_ref, bhn_ref, wout_ref,
                       out_ref, h_scratch, *, fused, unroll):
    """One grid step = (one batch tile, one tt-step time chunk).

    grid = (batch tiles ["parallel"], time chunks ["arbitrary"]).
    NOTE: correctness relies on (a) Pallas iterating the LAST grid axis (time)
    innermost / in order, and (b) per-core scratch under the "parallel" batch
    axis, so h_scratch sees all time chunks of one batch tile sequentially.
    """
    c = pl.program_id(1)  # time-chunk index (sequential recurrence axis)

    @pl.when(c == 0)
    def _():
        h_scratch[...] = h0_ref[...]

    E = h_scratch.shape[1]
    tt = gi_ref.shape[0]          # static chunk length
    cdt = whh_ref.dtype
    f32 = jnp.float32

    def step(t, carry):
        h_prev = h_scratch[...]                       # (b_tile, E), f32
        hc = h_prev.astype(cdt)
        # Weights/biases are re-read from VMEM inside the step (cheap vld,
        # pipelined) rather than held live across the unrolled body.
        if fused:
            # One MXU issue per step: (b_tile, E) @ (E, 3E), f32 accumulate.
            gh = jnp.dot(hc, whh_ref[...], preferred_element_type=f32)
            gh_r, gh_z, gh_n = gh[:, 0:E], gh[:, E:2 * E], gh[:, 2 * E:3 * E]
            gi = gi_ref[t].astype(f32)                # (b_tile, 3E)
            gi_r, gi_z, gi_n = gi[:, 0:E], gi[:, E:2 * E], gi[:, 2 * E:3 * E]
        else:
            # Small E: gate axis stays leading -> no cross-lane slicing.
            gh_r = jnp.dot(hc, whh_ref[0], preferred_element_type=f32)
            gh_z = jnp.dot(hc, whh_ref[1], preferred_element_type=f32)
            gh_n = jnp.dot(hc, whh_ref[2], preferred_element_type=f32)
            gi_r = gi_ref[t, 0].astype(f32)
            gi_z = gi_ref[t, 1].astype(f32)
            gi_n = gi_ref[t, 2].astype(f32)
        # PyTorch GRU gate math (gate order r, z, n), elementwise in f32.
        # b_ih and the r/z-gate b_hh are already folded into gi; b_hn cannot
        # be folded (it sits inside r * (...)), and is pre-broadcast.
        r = jax.nn.sigmoid(gi_r + gh_r)
        z = jax.nn.sigmoid(gi_z + gh_z)
        n = jnp.tanh(gi_n + r * (gh_n + bhn_ref[...]))
        h_new = (1.0 - z) * n + z * h_prev
        h_scratch[...] = h_new
        # Fused Linear(E -> 1) head: VPU multiply + cross-lane sum on the
        # otherwise-idle XLU slot; one row store into the tiny score block
        # (replaces the full (tt, b_tile, E) hidden-state writeback).
        out_ref[t] = jnp.sum(h_new * wout_ref[...], axis=-1)
        return carry

    # Partial unroll: lets the scheduler overlap MXU / EUP / XLU / stores
    # across consecutive steps without exploding code size.
    lax.fori_loop(0, tt, step, 0, unroll=unroll)


def sessionwise_gru_forward(item_embs, user_embs, params, *,
                            tt_chunk=128, b_tile_max=128,
                            compute_dtype=jnp.float32, gi_dtype=None):
    """item_embs: (B, S, I, E); user_embs: (B, U, E) -> scores (B, S, I).

    Knobs:
      tt_chunk     time steps per grid step (multiple of 8).
      b_tile_max   max batch-tile; on v7x pass ~ceil(B/2) so both TCs get work.
      gi_dtype     storage dtype of the precomputed input projection (set to
                   bf16 on v5e/v7x to halve the dominant HBM read / VMEM use).
    """
    B, S, I, E = item_embs.shape
    T = S * I
    f32 = jnp.float32
    gi_dtype = compute_dtype if gi_dtype is None else gi_dtype
    fused = (E % 128 == 0)        # lane-aligned gate slices only then
    assert tt_chunk % 8 == 0 and b_tile_max >= 8

    # ---- Padding / tiling ---------------------------------------------------
    sub = 8 if jnp.dtype(gi_dtype).itemsize == 4 else 16
    Bp_min = _round_up(B, sub)
    if Bp_min <= b_tile_max:
        b_tile = Bp_min                                   # single batch tile
    else:
        # Multiple batch tiles: score block's lane dim must be 128-aligned.
        b_tile = _round_up(min(b_tile_max, Bp_min), 128)
    Bp = _round_up(B, b_tile)
    tt = T if T <= tt_chunk else tt_chunk
    T_pad = _round_up(T, tt)

    # ---- Hoisted input projection: one XLA matmul, padded time-major gi -----
    w_ih = params["w_ih"].astype(f32)                     # (3E, E), rows [r|z|n]
    w_hh = params["w_hh"].astype(f32)
    b_ih3 = params["b_ih"].reshape(3, E).astype(f32)
    b_hh3 = params["b_hh"].reshape(3, E).astype(f32)
    # b_hh for the r/z gates folds into gi; b_hn cannot (inside r*(...)).
    gi_bias = jnp.stack([b_ih3[0] + b_hh3[0], b_ih3[1] + b_hh3[1], b_ih3[2]])  # (3,E)

    # Pad the small x BEFORE the projection (cheaper than padding the 3x gi).
    x = item_embs.reshape(B, T, E)
    x = jnp.pad(x, ((0, Bp - B), (0, T_pad - T), (0, 0))).astype(compute_dtype)

    if fused:
        w_ih_t = w_ih.T.astype(compute_dtype)                         # (E, 3E)
        gi = jnp.einsum("bte,ef->tbf", x, w_ih_t,
                        preferred_element_type=f32)                   # (T_pad, Bp, 3E)
        gi = (gi + gi_bias.reshape(-1)[None, None, :]).astype(gi_dtype)
        whh = w_hh.T.astype(compute_dtype)                            # (E, 3E)
        gi_spec = pl.BlockSpec((tt, b_tile, 3 * E), lambda b, c: (c, b, 0))
        whh_spec = pl.BlockSpec((E, 3 * E), lambda b, c: (0, 0))
    else:
        w_ih3_t = jnp.swapaxes(w_ih.reshape(3, E, E), 1, 2).astype(compute_dtype)
        gi = jnp.einsum("bte,gef->tgbf", x, w_ih3_t,
                        preferred_element_type=f32)                   # (T_pad, 3, Bp, E)
        gi = (gi + gi_bias[None, :, None, :]).astype(gi_dtype)
        whh = jnp.swapaxes(w_hh.reshape(3, E, E), 1, 2).astype(compute_dtype)  # (3,in,out)
        gi_spec = pl.BlockSpec((tt, 3, b_tile, E), lambda b, c: (c, 0, b, 0))
        whh_spec = pl.BlockSpec((3, E, E), lambda b, c: (0, 0, 0))

    h0 = jnp.pad(user_embs[:, 0, :].astype(f32), ((0, Bp - B), (0, 0)))     # (Bp, E)
    # Pre-broadcast once (JAX doesn't CSE broadcast_in_dim inside the loop).
    bhn_b = jnp.broadcast_to(b_hh3[2][None, :], (b_tile, E))
    wout_b = jnp.broadcast_to(params["w_out"].astype(f32).reshape(1, E), (b_tile, E))

    grid = (Bp // b_tile, T_pad // tt)
    unroll = min(tt, 8)

    # Explicit VMEM budget: double-buffered blocks + scratch + margin, so the
    # default scoped limit (16/32 MiB) never forces degenerate tiles.
    blk_bytes = (tt * 3 * b_tile * E * jnp.dtype(gi_dtype).itemsize   # gi block
                 + tt * b_tile * 4                                    # score block
                 + b_tile * E * 4                                     # h0 block
                 + 3 * E * E * jnp.dtype(compute_dtype).itemsize      # W_hh
                 + 2 * b_tile * E * 4)                                # b_hn + w_out
    vmem_limit = int(min(max(2 * blk_bytes + b_tile * E * 4 + (8 << 20),
                             32 << 20), 100 << 20))

    kernel = functools.partial(gru_session_kernel, fused=fused, unroll=unroll)

    scores_tb = pl.pallas_call(
        kernel,
        out_shape=jax.ShapeDtypeStruct((T_pad, Bp), f32),
        grid_spec=pltpu.PrefetchScalarGridSpec(
            num_scalar_prefetch=0,
            grid=grid,
            in_specs=[
                gi_spec,                                              # gi chunk
                pl.BlockSpec((b_tile, E), lambda b, c: (b, 0)),       # h0 tile
                whh_spec,                                             # W_hh
                pl.BlockSpec((b_tile, E), lambda b, c: (0, 0)),       # b_hn (broadcast)
                pl.BlockSpec((b_tile, E), lambda b, c: (0, 0)),       # w_out (broadcast)
            ],
            out_specs=pl.BlockSpec((tt, b_tile), lambda b, c: (c, b)),
            scratch_shapes=[pltpu.VMEM((b_tile, E), f32)],
        ),
        compiler_params=pltpu.CompilerParams(
            dimension_semantics=("parallel", "arbitrary"),            # batch ||, time seq
            vmem_limit_bytes=vmem_limit),
    )(gi, h0, whh, bhn_b, wout_b)

    # Padded tail time steps / batch rows hold garbage scores: slice them off.
    scores = scores_tb[:T, :B].T + params["b_out"].astype(f32)[0]     # (B, T)
    return scores.reshape(B, S, I)


def sessionwise_gru_reference(item_embs, user_embs, params):
    """Pure-JAX f32 reference of the PyTorch forward (for correctness check)."""
    B, S, I, E = item_embs.shape
    x = item_embs.reshape(B, S * I, E).astype(jnp.float32)   # (B, T, E)
    h0 = user_embs[:, 0, :].astype(jnp.float32)              # (B, E)
    w_ih, w_hh = params["w_ih"], params["w_hh"]
    b_ih, b_hh = params["b_ih"], params["b_hh"]

    def step(h, x_t):
        gi = x_t @ w_ih.T + b_ih
        gh = h @ w_hh.T + b_hh
        r = jax.nn.sigmoid(gi[:, :E] + gh[:, :E])
        z = jax.nn.sigmoid(gi[:, E:2 * E] + gh[:, E:2 * E])
        n = jnp.tanh(gi[:, 2 * E:] + r * gh[:, 2 * E:])
        h_new = (1.0 - z) * n + z * h
        return h_new, h_new

    _, hs = lax.scan(step, h0, jnp.swapaxes(x, 0, 1))         # (T, B, E)
    rnn_out = jnp.swapaxes(hs, 0, 1)                          # (B, T, E)
    y = rnn_out @ params["w_out"].T + params["b_out"]         # (B, T, 1)
    return y.reshape(B, S, I)


def init_params(key, E):
    """Deterministic init matching PyTorch GRU/Linear shapes (uniform +-1/sqrt(E))."""
    k = jax.random.split(key, 6)
    bound = 1.0 / jnp.sqrt(E)
    u = lambda kk, shape: jax.random.uniform(kk, shape, jnp.float32, -bound, bound)
    return {
        "w_ih": u(k[0], (3 * E, E)),   # weight_ih_l0  (gate order r, z, n)
        "w_hh": u(k[1], (3 * E, E)),   # weight_hh_l0
        "b_ih": u(k[2], (3 * E,)),     # bias_ih_l0
        "b_hh": u(k[3], (3 * E,)),     # bias_hh_l0
        "w_out": u(k[4], (1, E)),      # out_layer.weight
        "b_out": u(k[5], (1,)),        # out_layer.bias
    }


if __name__ == "__main__":
    fwd = jax.jit(sessionwise_gru_forward,
                  static_argnames=("tt_chunk", "b_tile_max",
                                   "compute_dtype", "gi_dtype"))

    def run_case(B, S, I, E, key, bf16_tol):
        k_item, k_user, k_par = jax.random.split(key, 3)
        # Stand-ins for the embedding module's outputs (item_embs, user_embs).
        item_embs = jax.random.normal(k_item, (B, S, I, E), jnp.float32)
        user_embs = jax.random.normal(k_user, (B, 3, E), jnp.float32)
        params = init_params(k_par, E)
        ref = sessionwise_gru_reference(item_embs, user_embs, params)

        # f32 path: tight correctness check vs. the f32 reference.
        out_f32 = jax.block_until_ready(
            fwd(item_embs, user_embs, params, compute_dtype=jnp.float32))
        assert out_f32.shape == (B, S, I)
        assert jnp.allclose(out_f32, ref, atol=1e-4, rtol=1e-4), "f32 mismatch"

        # bf16 MXU path (production-perf config): looser tolerance vs. f32 ref.
        out_bf16 = jax.block_until_ready(
            fwd(item_embs, user_embs, params, compute_dtype=jnp.bfloat16))
        assert out_bf16.shape == (B, S, I)
        assert jnp.allclose(out_bf16, ref, atol=bf16_tol, rtol=bf16_tol), "bf16 mismatch"

    key = jax.random.PRNGKey(0)
    k1, k2 = jax.random.split(key)
    # Small-E config: exercises the (3, E, E) per-gate weight path.
    run_case(B=2, S=4, I=2, E=32, key=k1, bf16_tol=5e-2)
    # Lane-aligned config: exercises the fused (E, 3E) single-matmul path
    # and the fused score head at E = 128.
    run_case(B=2, S=2, I=2, E=128, key=k2, bf16_tol=1e-1)

    print("KERNEL_OK")
</pallas_src>

<mosaic_0001>
module attributes {stable_mosaic.version = 11 : i64} {
  func.func @gru_session_kernel(%arg0: i32, %arg1: i32, %arg2: memref<8x3x8x32xf32, #tpu.memory_space<vmem>>, %arg3: memref<8x32xf32, #tpu.memory_space<vmem>>, %arg4: memref<3x32x32xf32, #tpu.memory_space<vmem>>, %arg5: memref<8x32xf32, #tpu.memory_space<vmem>>, %arg6: memref<8x32xf32, #tpu.memory_space<vmem>>, %arg7: memref<8x8xf32, #tpu.memory_space<vmem>>, %arg8: memref<8x32xf32, #tpu.memory_space<vmem>>) attributes {dimension_semantics = [#tpu.dimension_semantics<parallel>, #tpu.dimension_semantics<arbitrary>], iteration_bounds = array<i64: 1, 1>, scalar_prefetch = 0 : i64, scratch_operands = 1 : i64, tpu.core_type = #tpu.core_type<tc>, window_params = [{transform_indices = @transform_0, window_bounds = array<i64: 8, 3, 8, 32>}, {transform_indices = @transform_1, window_bounds = array<i64: 8, 32>}, {pipeline_mode = #tpu.pipeline_mode<synchronous>, transform_indices = @transform_2, window_bounds = array<i64: 3, 32, 32>}, {pipeline_mode = #tpu.pipeline_mode<synchronous>, transform_indices = @transform_3, window_bounds = array<i64: 8, 32>}, {pipeline_mode = #tpu.pipeline_mode<synchronous>, transform_indices = @transform_4, window_bounds = array<i64: 8, 32>}, {transform_indices = @transform_5, window_bounds = array<i64: 8, 8>}]} {
    %c0_i32 = arith.constant 0 : i32
    %0 = arith.cmpi eq, %arg1, %c0_i32 : i32
    %1 = arith.extui %0 : i1 to i32
    %c0_i32_0 = arith.constant 0 : i32
    %2 = arith.cmpi ne, %1, %c0_i32_0 : i32
    scf.if %2 {
      %c0_270 = arith.constant 0 : index
      %c0_271 = arith.constant 0 : index
      %395 = vector.load %arg3[%c0_270, %c0_271] : memref<8x32xf32, #tpu.memory_space<vmem>>, vector<8x32xf32>
      %c0_272 = arith.constant 0 : index
      %c0_273 = arith.constant 0 : index
      %396 = vector.load %arg8[%c0_272, %c0_273] : memref<8x32xf32, #tpu.memory_space<vmem>>, vector<8x32xf32>
      tpu.vector_store %arg8[%c0_272, %c0_273], %395 {strides = array<i32>} : memref<8x32xf32, #tpu.memory_space<vmem>>, vector<8x32xf32>,
    } else {
    }
    %c0_i32_1 = arith.constant 0 : i32
    %c0 = arith.constant 0 : index
    %c0_2 = arith.constant 0 : index
    %3 = vector.load %arg8[%c0, %c0_2] : memref<8x32xf32, #tpu.memory_space<vmem>>, vector<8x32xf32>
    %c0_3 = arith.constant 0 : index
    %c0_4 = arith.constant 0 : index
    %c0_5 = arith.constant 0 : index
    %4 = vector.load %arg4[%c0_3, %c0_4, %c0_5] : memref<3x32x32xf32, #tpu.memory_space<vmem>>, vector<1x32x32xf32>
    %5 = vector.shape_cast %4 : vector<1x32x32xf32> to vector<32x32xf32>
    %cst = arith.constant dense<0.000000e+00> : vector<8x32xf32>
    %6 = tpu.matmul %3, %5, %cst {dimension_numbers = #tpu.dot_dimension_numbers<[1], [0], [0], [1], [0, 0, 1, 1], [], []>} : vector<8x32xf32>, vector<32x32xf32>, vector<8x32xf32> -> vector<8x32xf32>
    %c1 = arith.constant 1 : index
    %c0_6 = arith.constant 0 : index
    %c0_7 = arith.constant 0 : index
    %7 = vector.load %arg4[%c1, %c0_6, %c0_7] : memref<3x32x32xf32, #tpu.memory_space<vmem>>, vector<1x32x32xf32>
    %8 = vector.shape_cast %7 : vector<1x32x32xf32> to vector<32x32xf32>
    %cst_8 = arith.constant dense<0.000000e+00> : vector<8x32xf32>
    %9 = tpu.matmul %3, %8, %cst_8 {dimension_numbers = #tpu.dot_dimension_numbers<[1], [0], [0], [1], [0, 0, 1, 1], [], []>} : vector<8x32xf32>, vector<32x32xf32>, vector<8x32xf32> -> vector<8x32xf32>
    %c2 = arith.constant 2 : index
    %c0_9 = arith.constant 0 : index
    %c0_10 = arith.constant 0 : index
    %10 = vector.load %arg4[%c2, %c0_9, %c0_10] : memref<3x32x32xf32, #tpu.memory_space<vmem>>, vector<1x32x32xf32>
    %11 = vector.shape_cast %10 : vector<1x32x32xf32> to vector<32x32xf32>
    %cst_11 = arith.constant dense<0.000000e+00> : vector<8x32xf32>
    %12 = tpu.matmul %3, %11, %cst_11 {dimension_numbers = #tpu.dot_dimension_numbers<[1], [0], [0], [1], [0, 0, 1, 1], [], []>} : vector<8x32xf32>, vector<32x32xf32>, vector<8x32xf32> -> vector<8x32xf32>
    %13 = arith.index_cast %c0_i32_1 : i32 to index
    %c0_12 = arith.constant 0 : index
    %c0_13 = arith.constant 0 : index
    %c0_14 = arith.constant 0 : index
    %14 = vector.load %arg2[%13, %c0_12, %c0_13, %c0_14] : memref<8x3x8x32xf32, #tpu.memory_space<vmem>>, vector<1x1x8x32xf32>
    %15 = vector.shape_cast %14 : vector<1x1x8x32xf32> to vector<8x32xf32>
    %16 = arith.index_cast %c0_i32_1 : i32 to index
    %c1_15 = arith.constant 1 : index
    %c0_16 = arith.constant 0 : index
    %c0_17 = arith.constant 0 : index
    %17 = vector.load %arg2[%16, %c1_15, %c0_16, %c0_17] : memref<8x3x8x32xf32, #tpu.memory_space<vmem>>, vector<1x1x8x32xf32>
    %18 = vector.shape_cast %17 : vector<1x1x8x32xf32> to vector<8x32xf32>
    %19 = arith.index_cast %c0_i32_1 : i32 to index
    %c2_18 = arith.constant 2 : index
    %c0_19 = arith.constant 0 : index
    %c0_20 = arith.constant 0 : index
    %20 = vector.load %arg2[%19, %c2_18, %c0_19, %c0_20] : memref<8x3x8x32xf32, #tpu.memory_space<vmem>>, vector<1x1x8x32xf32>
    %21 = vector.shape_cast %20 : vector<1x1x8x32xf32> to vector<8x32xf32>
    %22 = arith.addf %15, %6 : vector<8x32xf32>
    %23 = arith.negf %22 : vector<8x32xf32>
    %24 = math.exp %23 : vector<8x32xf32>
    %cst_21 = arith.constant 1.000000e+00 : f32
    %25 = vector.broadcast %cst_21 : f32 to vector<8x32xf32>
    %26 = arith.addf %25, %24 : vector<8x32xf32>
    %27 = arith.divf %25, %26 : vector<8x32xf32>
    %28 = arith.addf %18, %9 : vector<8x32xf32>
    %29 = arith.negf %28 : vector<8x32xf32>
    %30 = math.exp %29 : vector<8x32xf32>
    %cst_22 = arith.constant 1.000000e+00 : f32
    %31 = vector.broadcast %cst_22 : f32 to vector<8x32xf32>
    %32 = arith.addf %31, %30 : vector<8x32xf32>
    %33 = arith.divf %31, %32 : vector<8x32xf32>
    %c0_23 = arith.constant 0 : index
    %c0_24 = arith.constant 0 : index
    %34 = vector.load %arg5[%c0_23, %c0_24] : memref<8x32xf32, #tpu.memory_space<vmem>>, vector<8x32xf32>
    %35 = arith.addf %12, %34 : vector<8x32xf32>
    %36 = arith.mulf %27, %35 : vector<8x32xf32>
    %37 = arith.addf %21, %36 : vector<8x32xf32>
    %38 = math.tanh %37 : vector<8x32xf32>
    %cst_25 = arith.constant 1.000000e+00 : f32
    %39 = vector.broadcast %cst_25 : f32 to vector<8x32xf32>
    %40 = arith.subf %39, %33 : vector<8x32xf32>
    %41 = arith.mulf %40, %38 : vector<8x32xf32>
    %42 = arith.mulf %33, %3 : vector<8x32xf32>
    %43 = arith.addf %41, %42 : vector<8x32xf32>
    %c0_26 = arith.constant 0 : index
    %c0_27 = arith.constant 0 : index
    %44 = vector.load %arg8[%c0_26, %c0_27] : memref<8x32xf32, #tpu.memory_space<vmem>>, vector<8x32xf32>
    tpu.vector_store %arg8[%c0_26, %c0_27], %43 {strides = array<i32>} : memref<8x32xf32, #tpu.memory_space<vmem>>, vector<8x32xf32>,
    %c0_28 = arith.constant 0 : index
    %c0_29 = arith.constant 0 : index
    %45 = vector.load %arg6[%c0_28, %c0_29] : memref<8x32xf32, #tpu.memory_space<vmem>>, vector<8x32xf32>
    %46 = arith.mulf %43, %45 : vector<8x32xf32>
    %cst_30 = arith.constant dense<0.000000e+00> : vector<8xf32>
    %47 = vector.multi_reduction <add>, %46, %cst_30 [1] : vector<8x32xf32> to vector<8xf32>
    %48 = arith.index_cast %c0_i32_1 : i32 to index
    %c0_31 = arith.constant 0 : index
    %49 = vector.load %arg7[%48, %c0_31] : memref<8x8xf32, #tpu.memory_space<vmem>>, vector<1x8xf32>
    %50 = vector.shape_cast %49 : vector<1x8xf32> to vector<8xf32>
    %51 = vector.shape_cast %47 : vector<8xf32> to vector<1x8xf32>
    tpu.vector_store %arg7[%48, %c0_31], %51 {strides = array<i32>} : memref<8x8xf32, #tpu.memory_space<vmem>>, vector<1x8xf32>,
    %c1_i32 = arith.constant 1 : i32
    %c0_32 = arith.constant 0 : index
    %c0_33 = arith.constant 0 : index
    %52 = vector.load %arg8[%c0_32, %c0_33] : memref<8x32xf32, #tpu.memory_space<vmem>>, vector<8x32xf32>
    %c0_34 = arith.constant 0 : index
    %c0_35 = arith.constant 0 : index
    %c0_36 = arith.constant 0 : index
    %53 = vector.load %arg4[%c0_34, %c0_35, %c0_36] : memref<3x32x32xf32, #tpu.memory_space<vmem>>, vector<1x32x32xf32>
    %54 = vector.shape_cast %53 : vector<1x32x32xf32> to vector<32x32xf32>
    %cst_37 = arith.constant dense<0.000000e+00> : vector<8x32xf32>
    %55 = tpu.matmul %52, %54, %cst_37 {dimension_numbers = #tpu.dot_dimension_numbers<[1], [0], [0], [1], [0, 0, 1, 1], [], []>} : vector<8x32xf32>, vector<32x32xf32>, vector<8x32xf32> -> vector<8x32xf32>
    %c1_38 = arith.constant 1 : index
    %c0_39 = arith.constant 0 : index
    %c0_40 = arith.constant 0 : index
    %56 = vector.load %arg4[%c1_38, %c0_39, %c0_40] : memref<3x32x32xf32, #tpu.memory_space<vmem>>, vector<1x32x32xf32>
    %57 = vector.shape_cast %56 : vector<1x32x32xf32> to vector<32x32xf32>
    %cst_41 = arith.constant dense<0.000000e+00> : vector<8x32xf32>
    %58 = tpu.matmul %52, %57, %cst_41 {dimension_numbers = #tpu.dot_dimension_numbers<[1], [0], [0], [1], [0, 0, 1, 1], [], []>} : vector<8x32xf32>, vector<32x32xf32>, vector<8x32xf32> -> vector<8x32xf32>
    %c2_42 = arith.constant 2 : index
    %c0_43 = arith.constant 0 : index
    %c0_44 = arith.constant 0 : index
    %59 = vector.load %arg4[%c2_42, %c0_43, %c0_44] : memref<3x32x32xf32, #tpu.memory_space<vmem>>, vector<1x32x32xf32>
    %60 = vector.shape_cast %59 : vector<1x32x32xf32> to vector<32x32xf32>
    %cst_45 = arith.constant dense<0.000000e+00> : vector<8x32xf32>
    %61 = tpu.matmul %52, %60, %cst_45 {dimension_numbers = #tpu.dot_dimension_numbers<[1], [0], [0], [1], [0, 0, 1, 1], [], []>} : vector<8x32xf32>, vector<32x32xf32>, vector<8x32xf32> -> vector<8x32xf32>
    %62 = arith.index_cast %c1_i32 : i32 to index
    %c0_46 = arith.constant 0 : index
    %c0_47 = arith.constant 0 : index
    %c0_48 = arith.constant 0 : index
    %63 = vector.load %arg2[%62, %c0_46, %c0_47, %c0_48] : memref<8x3x8x32xf32, #tpu.memory_space<vmem>>, vector<1x1x8x32xf32>
    %64 = vector.shape_cast %63 : vector<1x1x8x32xf32> to vector<8x32xf32>
    %65 = arith.index_cast %c1_i32 : i32 to index
    %c1_49 = arith.constant 1 : index
    %c0_50 = arith.constant 0 : index
    %c0_51 = arith.constant 0 : index
    %66 = vector.load %arg2[%65, %c1_49, %c0_50, %c0_51] : memref<8x3x8x32xf32, #tpu.memory_space<vmem>>, vector<1x1x8x32xf32>
    %67 = vector.shape_cast %66 : vector<1x1x8x32xf32> to vector<8x32xf32>
    %68 = arith.index_cast %c1_i32 : i32 to index
    %c2_52 = arith.constant 2 : index
    %c0_53 = arith.constant 0 : index
    %c0_54 = arith.constant 0 : index
    %69 = vector.load %arg2[%68, %c2_52, %c0_53, %c0_54] : memref<8x3x8x32xf32, #tpu.memory_space<vmem>>, vector<1x1x8x32xf32>
    %70 = vector.shape_cast %69 : vector<1x1x8x32xf32> to vector<8x32xf32>
    %71 = arith.addf %64, %55 : vector<8x32xf32>
    %72 = arith.negf %71 : vector<8x32xf32>
    %73 = math.exp %72 : vector<8x32xf32>
    %cst_55 = arith.constant 1.000000e+00 : f32
    %74 = vector.broadcast %cst_55 : f32 to vector<8x32xf32>
    %75 = arith.addf %74, %73 : vector<8x32xf32>
    %76 = arith.divf %74, %75 : vector<8x32xf32>
    %77 = arith.addf %67, %58 : vector<8x32xf32>
    %78 = arith.negf %77 : vector<8x32xf32>
    %79 = math.exp %78 : vector<8x32xf32>
    %cst_56 = arith.constant 1.000000e+00 : f32
    %80 = vector.broadcast %cst_56 : f32 to vector<8x32xf32>
    %81 = arith.addf %80, %79 : vector<8x32xf32>
    %82 = arith.divf %80, %81 : vector<8x32xf32>
    %c0_57 = arith.constant 0 : index
    %c0_58 = arith.constant 0 : index
    %83 = vector.load %arg5[%c0_57, %c0_58] : memref<8x32xf32, #tpu.memory_space<vmem>>, vector<8x32xf32>
    %84 = arith.addf %61, %83 : vector<8x32xf32>
    %85 = arith.mulf %76, %84 : vector<8x32xf32>
    %86 = arith.addf %70, %85 : vector<8x32xf32>
    %87 = math.tanh %86 : vector<8x32xf32>
    %cst_59 = arith.constant 1.000000e+00 : f32
    %88 = vector.broadcast %cst_59 : f32 to vector<8x32xf32>
    %89 = arith.subf %88, %82 : vector<8x32xf32>
    %90 = arith.mulf %89, %87 : vector<8x32xf32>
    %91 = arith.mulf %82, %52 : vector<8x32xf32>
    %92 = arith.addf %90, %91 : vector<8x32xf32>
    %c0_60 = arith.constant 0 : index
    %c0_61 = arith.constant 0 : index
    %93 = vector.load %arg8[%c0_60, %c0_61] : memref<8x32xf32, #tpu.memory_space<vmem>>, vector<8x32xf32>
    tpu.vector_store %arg8[%c0_60, %c0_61], %92 {strides = array<i32>} : memref<8x32xf32, #tpu.memory_space<vmem>>, vector<8x32xf32>,
    %c0_62 = arith.constant 0 : index
    %c0_63 = arith.constant 0 : index
    %94 = vector.load %arg6[%c0_62, %c0_63] : memref<8x32xf32, #tpu.memory_space<vmem>>, vector<8x32xf32>
    %95 = arith.mulf %92, %94 : vector<8x32xf32>
    %cst_64 = arith.constant dense<0.000000e+00> : vector<8xf32>
    %96 = vector.multi_reduction <add>, %95, %cst_64 [1] : vector<8x32xf32> to vector<8xf32>
    %97 = arith.index_cast %c1_i32 : i32 to index
    %c0_65 = arith.constant 0 : index
    %98 = vector.load %arg7[%97, %c0_65] : memref<8x8xf32, #tpu.memory_space<vmem>>, vector<1x8xf32>
    %99 = vector.shape_cast %98 : vector<1x8xf32> to vector<8xf32>
    %100 = vector.shape_cast %96 : vector<8xf32> to vector<1x8xf32>
    tpu.vector_store %arg7[%97, %c0_65], %100 {strides = array<i32>} : memref<8x8xf32, #tpu.memory_space<vmem>>, vector<1x8xf32>,
    %c2_i32 = arith.constant 2 : i32
    %c0_66 = arith.constant 0 : index
    %c0_67 = arith.constant 0 : index
    %101 = vector.load %arg8[%c0_66, %c0_67] : memref<8x32xf32, #tpu.memory_space<vmem>>, vector<8x32xf32>
    %c0_68 = arith.constant 0 : index
    %c0_69 = arith.constant 0 : index
    %c0_70 = arith.constant 0 : index
    %102 = vector.load %arg4[%c0_68, %c0_69, %c0_70] : memref<3x32x32xf32, #tpu.memory_space<vmem>>, vector<1x32x32xf32>
    %103 = vector.shape_cast %102 : vector<1x32x32xf32> to vector<32x32xf32>
    %cst_71 = arith.constant dense<0.000000e+00> : vector<8x32xf32>
    %104 = tpu.matmul %101, %103, %cst_71 {dimension_numbers = #tpu.dot_dimension_numbers<[1], [0], [0], [1], [0, 0, 1, 1], [], []>} : vector<8x32xf32>, vector<32x32xf32>, vector<8x32xf32> -> vector<8x32xf32>
    %c1_72 = arith.constant 1 : index
    %c0_73 = arith.constant 0 : index
    %c0_74 = arith.constant 0 : index
    %105 = vector.load %arg4[%c1_72, %c0_73, %c0_74] : memref<3x32x32xf32, #tpu.memory_space<vmem>>, vector<1x32x32xf32>
    %106 = vector.shape_cast %105 : vector<1x32x32xf32> to vector<32x32xf32>
    %cst_75 = arith.constant dense<0.000000e+00> : vector<8x32xf32>
    %107 = tpu.matmul %101, %106, %cst_75 {dimension_numbers = #tpu.dot_dimension_numbers<[1], [0], [0], [1], [0, 0, 1, 1], [], []>} : vector<8x32xf32>, vector<32x32xf32>, vector<8x32xf32> -> vector<8x32xf32>
    %c2_76 = arith.constant 2 : index
    %c0_77 = arith.constant 0 : index
    %c0_78 = arith.constant 0 : index
    %108 = vector.load %arg4[%c2_76, %c0_77, %c0_78] : memref<3x32x32xf32, #tpu.memory_space<vmem>>, vector<1x32x32xf32>
    %109 = vector.shape_cast %108 : vector<1x32x32xf32> to vector<32x32xf32>
    %cst_79 = arith.constant dense<0.000000e+00> : vector<8x32xf32>
    %110 = tpu.matmul %101, %109, %cst_79 {dimension_numbers = #tpu.dot_dimension_numbers<[1], [0], [0], [1], [0, 0, 1, 1], [], []>} : vector<8x32xf32>, vector<32x32xf32>, vector<8x32xf32> -> vector<8x32xf32>
    %111 = arith.index_cast %c2_i32 : i32 to index
    %c0_80 = arith.constant 0 : index
    %c0_81 = arith.constant 0 : index
    %c0_82 = arith.constant 0 : index
    %112 = vector.load %arg2[%111, %c0_80, %c0_81, %c0_82] : memref<8x3x8x32xf32, #tpu.memory_space<vmem>>, vector<1x1x8x32xf32>
    %113 = vector.shape_cast %112 : vector<1x1x8x32xf32> to vector<8x32xf32>
    %114 = arith.index_cast %c2_i32 : i32 to index
    %c1_83 = arith.constant 1 : index
    %c0_84 = arith.constant 0 : index
    %c0_85 = arith.constant 0 : index
    %115 = vector.load %arg2[%114, %c1_83, %c0_84, %c0_85] : memref<8x3x8x32xf32, #tpu.memory_space<vmem>>, vector<1x1x8x32xf32>
    %116 = vector.shape_cast %115 : vector<1x1x8x32xf32> to vector<8x32xf32>
    %117 = arith.index_cast %c2_i32 : i32 to index
    %c2_86 = arith.constant 2 : index
    %c0_87 = arith.constant 0 : index
    %c0_88 = arith.constant 0 : index
    %118 = vector.load %arg2[%117, %c2_86, %c0_87, %c0_88] : memref<8x3x8x32xf32, #tpu.memory_space<vmem>>, vector<1x1x8x32xf32>
    %119 = vector.shape_cast %118 : vector<1x1x8x32xf32> to vector<8x32xf32>
    %120 = arith.addf %113, %104 : vector<8x32xf32>
    %121 = arith.negf %120 : vector<8x32xf32>
    %122 = math.exp %121 : vector<8x32xf32>
    %cst_89 = arith.constant 1.000000e+00 : f32
    %123 = vector.broadcast %cst_89 : f32 to vector<8x32xf32>
    %124 = arith.addf %123, %122 : vector<8x32xf32>
    %125 = arith.divf %123, %124 : vector<8x32xf32>
    %126 = arith.addf %116, %107 : vector<8x32xf32>
    %127 = arith.negf %126 : vector<8x32xf32>
    %128 = math.exp %127 : vector<8x32xf32>
    %cst_90 = arith.constant 1.000000e+00 : f32
    %129 = vector.broadcast %cst_90 : f32 to vector<8x32xf32>
    %130 = arith.addf %129, %128 : vector<8x32xf32>
    %131 = arith.divf %129, %130 : vector<8x32xf32>
    %c0_91 = arith.constant 0 : index
    %c0_92 = arith.constant 0 : index
    %132 = vector.load %arg5[%c0_91, %c0_92] : memref<8x32xf32, #tpu.memory_space<vmem>>, vector<8x32xf32>
    %133 = arith.addf %110, %132 : vector<8x32xf32>
    %134 = arith.mulf %125, %133 : vector<8x32xf32>
    %135 = arith.addf %119, %134 : vector<8x32xf32>
    %136 = math.tanh %135 : vector<8x32xf32>
    %cst_93 = arith.constant 1.000000e+00 : f32
    %137 = vector.broadcast %cst_93 : f32 to vector<8x32xf32>
    %138 = arith.subf %137, %131 : vector<8x32xf32>
    %139 = arith.mulf %138, %136 : vector<8x32xf32>
    %140 = arith.mulf %131, %101 : vector<8x32xf32>
    %141 = arith.addf %139, %140 : vector<8x32xf32>
    %c0_94 = arith.constant 0 : index
    %c0_95 = arith.constant 0 : index
    %142 = vector.load %arg8[%c0_94, %c0_95] : memref<8x32xf32, #tpu.memory_space<vmem>>, vector<8x32xf32>
    tpu.vector_store %arg8[%c0_94, %c0_95], %141 {strides = array<i32>} : memref<8x32xf32, #tpu.memory_space<vmem>>, vector<8x32xf32>,
    %c0_96 = arith.constant 0 : index
    %c0_97 = arith.constant 0 : index
    %143 = vector.load %arg6[%c0_96, %c0_97] : memref<8x32xf32, #tpu.memory_space<vmem>>, vector<8x32xf32>
    %144 = arith.mulf %141, %143 : vector<8x32xf32>
    %cst_98 = arith.constant dense<0.000000e+00> : vector<8xf32>
    %145 = vector.multi_reduction <add>, %144, %cst_98 [1] : vector<8x32xf32> to vector<8xf32>
    %146 = arith.index_cast %c2_i32 : i32 to index
    %c0_99 = arith.constant 0 : index
    %147 = vector.load %arg7[%146, %c0_99] : memref<8x8xf32, #tpu.memory_space<vmem>>, vector<1x8xf32>
    %148 = vector.shape_cast %147 : vector<1x8xf32> to vector<8xf32>
    %149 = vector.shape_cast %145 : vector<8xf32> to vector<1x8xf32>
    tpu.vector_store %arg7[%146, %c0_99], %149 {strides = array<i32>} : memref<8x8xf32, #tpu.memory_space<vmem>>, vector<1x8xf32>,
    %c3_i32 = arith.constant 3 : i32
    %c0_100 = arith.constant 0 : index
    %c0_101 = arith.constant 0 : index
    %150 = vector.load %arg8[%c0_100, %c0_101] : memref<8x32xf32, #tpu.memory_space<vmem>>, vector<8x32xf32>
    %c0_102 = arith.constant 0 : index
    %c0_103 = arith.constant 0 : index
    %c0_104 = arith.constant 0 : index
    %151 = vector.load %arg4[%c0_102, %c0_103, %c0_104] : memref<3x32x32xf32, #tpu.memory_space<vmem>>, vector<1x32x32xf32>
    %152 = vector.shape_cast %151 : vector<1x32x32xf32> to vector<32x32xf32>
    %cst_105 = arith.constant dense<0.000000e+00> : vector<8x32xf32>
    %153 = tpu.matmul %150, %152, %cst_105 {dimension_numbers = #tpu.dot_dimension_numbers<[1], [0], [0], [1], [0, 0, 1, 1], [], []>} : vector<8x32xf32>, vector<32x32xf32>, vector<8x32xf32> -> vector<8x32xf32>
    %c1_106 = arith.constant 1 : index
    %c0_107 = arith.constant 0 : index
    %c0_108 = arith.constant 0 : index
    %154 = vector.load %arg4[%c1_106, %c0_107, %c0_108] : memref<3x32x32xf32, #tpu.memory_space<vmem>>, vector<1x32x32xf32>
    %155 = vector.shape_cast %154 : vector<1x32x32xf32> to vector<32x32xf32>
    %cst_109 = arith.constant dense<0.000000e+00> : vector<8x32xf32>
    %156 = tpu.matmul %150, %155, %cst_109 {dimension_numbers = #tpu.dot_dimension_numbers<[1], [0], [0], [1], [0, 0, 1, 1], [], []>} : vector<8x32xf32>, vector<32x32xf32>, vector<8x32xf32> -> vector<8x32xf32>
    %c2_110 = arith.constant 2 : index
    %c0_111 = arith.constant 0 : index
    %c0_112 = arith.constant 0 : index
    %157 = vector.load %arg4[%c2_110, %c0_111, %c0_112] : memref<3x32x32xf32, #tpu.memory_space<vmem>>, vector<1x32x32xf32>
    %158 = vector.shape_cast %157 : vector<1x32x32xf32> to vector<32x32xf32>
    %cst_113 = arith.constant dense<0.000000e+00> : vector<8x32xf32>
    %159 = tpu.matmul %150, %158, %cst_113 {dimension_numbers = #tpu.dot_dimension_numbers<[1], [0], [0], [1], [0, 0, 1, 1], [], []>} : vector<8x32xf32>, vector<32x32xf32>, vector<8x32xf32> -> vector<8x32xf32>
    %160 = arith.index_cast %c3_i32 : i32 to index
    %c0_114 = arith.constant 0 : index
    %c0_115 = arith.constant 0 : index
    %c0_116 = arith.constant 0 : index
    %161 = vector.load %arg2[%160, %c0_114, %c0_115, %c0_116] : memref<8x3x8x32xf32, #tpu.memory_space<vmem>>, vector<1x1x8x32xf32>
    %162 = vector.shape_cast %161 : vector<1x1x8x32xf32> to vector<8x32xf32>
    %163 = arith.index_cast %c3_i32 : i32 to index
    %c1_117 = arith.constant 1 : index
    %c0_118 = arith.constant 0 : index
    %c0_119 = arith.constant 0 : index
    %164 = vector.load %arg2[%163, %c1_117, %c0_118, %c0_119] : memref<8x3x8x32xf32, #tpu.memory_space<vmem>>, vector<1x1x8x32xf32>
    %165 = vector.shape_cast %164 : vector<1x1x8x32xf32> to vector<8x32xf32>
    %166 = arith.index_cast %c3_i32 : i32 to index
    %c2_120 = arith.constant 2 : index
    %c0_121 = arith.constant 0 : index
    %c0_122 = arith.constant 0 : index
    %167 = vector.load %arg2[%166, %c2_120, %c0_121, %c0_122] : memref<8x3x8x32xf32, #tpu.memory_space<vmem>>, vector<1x1x8x32xf32>
    %168 = vector.shape_cast %167 : vector<1x1x8x32xf32> to vector<8x32xf32>
    %169 = arith.addf %162, %153 : vector<8x32xf32>
    %170 = arith.negf %169 : vector<8x32xf32>
    %171 = math.exp %170 : vector<8x32xf32>
    %cst_123 = arith.constant 1.000000e+00 : f32
    %172 = vector.broadcast %cst_123 : f32 to vector<8x32xf32>
    %173 = arith.addf %172, %171 : vector<8x32xf32>
    %174 = arith.divf %172, %173 : vector<8x32xf32>
    %175 = arith.addf %165, %156 : vector<8x32xf32>
    %176 = arith.negf %175 : vector<8x32xf32>
    %177 = math.exp %176 : vector<8x32xf32>
    %cst_124 = arith.constant 1.000000e+00 : f32
    %178 = vector.broadcast %cst_124 : f32 to vector<8x32xf32>
    %179 = arith.addf %178, %177 : vector<8x32xf32>
    %180 = arith.divf %178, %179 : vector<8x32xf32>
    %c0_125 = arith.constant 0 : index
    %c0_126 = arith.constant 0 : index
    %181 = vector.load %arg5[%c0_125, %c0_126] : memref<8x32xf32, #tpu.memory_space<vmem>>, vector<8x32xf32>
    %182 = arith.addf %159, %181 : vector<8x32xf32>
    %183 = arith.mulf %174, %182 : vector<8x32xf32>
    %184 = arith.addf %168, %183 : vector<8x32xf32>
    %185 = math.tanh %184 : vector<8x32xf32>
    %cst_127 = arith.constant 1.000000e+00 : f32
    %186 = vector.broadcast %cst_127 : f32 to vector<8x32xf32>
    %187 = arith.subf %186, %180 : vector<8x32xf32>
    %188 = arith.mulf %187, %185 : vector<8x32xf32>
    %189 = arith.mulf %180, %150 : vector<8x32xf32>
    %190 = arith.addf %188, %189 : vector<8x32xf32>
    %c0_128 = arith.constant 0 : index
    %c0_129 = arith.constant 0 : index
    %191 = vector.load %arg8[%c0_128, %c0_129] : memref<8x32xf32, #tpu.memory_space<vmem>>, vector<8x32xf32>
    tpu.vector_store %arg8[%c0_128, %c0_129], %190 {strides = array<i32>} : memref<8x32xf32, #tpu.memory_space<vmem>>, vector<8x32xf32>,
    %c0_130 = arith.constant 0 : index
    %c0_131 = arith.constant 0 : index
    %192 = vector.load %arg6[%c0_130, %c0_131] : memref<8x32xf32, #tpu.memory_space<vmem>>, vector<8x32xf32>
    %193 = arith.mulf %190, %192 : vector<8x32xf32>
    %cst_132 = arith.constant dense<0.000000e+00> : vector<8xf32>
    %194 = vector.multi_reduction <add>, %193, %cst_132 [1] : vector<8x32xf32> to vector<8xf32>
    %195 = arith.index_cast %c3_i32 : i32 to index
    %c0_133 = arith.constant 0 : index
    %196 = vector.load %arg7[%195, %c0_133] : memref<8x8xf32, #tpu.memory_space<vmem>>, vector<1x8xf32>
    %197 = vector.shape_cast %196 : vector<1x8xf32> to vector<8xf32>
    %198 = vector.shape_cast %194 : vector<8xf32> to vector<1x8xf32>
    tpu.vector_store %arg7[%195, %c0_133], %198 {strides = array<i32>} : memref<8x8xf32, #tpu.memory_space<vmem>>, vector<1x8xf32>,
    %c4_i32 = arith.constant 4 : i32
    %c0_134 = arith.constant 0 : index
    %c0_135 = arith.constant 0 : index
    %199 = vector.load %arg8[%c0_134, %c0_135] : memref<8x32xf32, #tpu.memory_space<vmem>>, vector<8x32xf32>
    %c0_136 = arith.constant 0 : index
    %c0_137 = arith.constant 0 : index
    %c0_138 = arith.constant 0 : index
    %200 = vector.load %arg4[%c0_136, %c0_137, %c0_138] : memref<3x32x32xf32, #tpu.memory_space<vmem>>, vector<1x32x32xf32>
    %201 = vector.shape_cast %200 : vector<1x32x32xf32> to vector<32x32xf32>
    %cst_139 = arith.constant dense<0.000000e+00> : vector<8x32xf32>
    %202 = tpu.matmul %199, %201, %cst_139 {dimension_numbers = #tpu.dot_dimension_numbers<[1], [0], [0], [1], [0, 0, 1, 1], [], []>} : vector<8x32xf32>, vector<32x32xf32>, vector<8x32xf32> -> vector<8x32xf32>
    %c1_140 = arith.constant 1 : index
    %c0_141 = arith.constant 0 : index
    %c0_142 = arith.constant 0 : index
    %203 = vector.load %arg4[%c1_140, %c0_141, %c0_142] : memref<3x32x32xf32, #tpu.memory_space<vmem>>, vector<1x32x32xf32>
    %204 = vector.shape_cast %203 : vector<1x32x32xf32> to vector<32x32xf32>
    %cst_143 = arith.constant dense<0.000000e+00> : vector<8x32xf32>
    %205 = tpu.matmul %199, %204, %cst_143 {dimension_numbers = #tpu.dot_dimension_numbers<[1], [0], [0], [1], [0, 0, 1, 1], [], []>} : vector<8x32xf32>, vector<32x32xf32>, vector<8x32xf32> -> vector<8x32xf32>
    %c2_144 = arith.constant 2 : index
    %c0_145 = arith.constant 0 : index
    %c0_146 = arith.constant 0 : index
    %206 = vector.load %arg4[%c2_144, %c0_145, %c0_146] : memref<3x32x32xf32, #tpu.memory_space<vmem>>, vector<1x32x32xf32>
    %207 = vector.shape_cast %206 : vector<1x32x32xf32> to vector<32x32xf32>
    %cst_147 = arith.constant dense<0.000000e+00> : vector<8x32xf32>
    %208 = tpu.matmul %199, %207, %cst_147 {dimension_numbers = #tpu.dot_dimension_numbers<[1], [0], [0], [1], [0, 0, 1, 1], [], []>} : vector<8x32xf32>, vector<32x32xf32>, vector<8x32xf32> -> vector<8x32xf32>
    %209 = arith.index_cast %c4_i32 : i32 to index
    %c0_148 = arith.constant 0 : index
    %c0_149 = arith.constant 0 : index
    %c0_150 = arith.constant 0 : index
    %210 = vector.load %arg2[%209, %c0_148, %c0_149, %c0_150] : memref<8x3x8x32xf32, #tpu.memory_space<vmem>>, vector<1x1x8x32xf32>
    %211 = vector.shape_cast %210 : vector<1x1x8x32xf32> to vector<8x32xf32>
    %212 = arith.index_cast %c4_i32 : i32 to index
    %c1_151 = arith.constant 1 : index
    %c0_152 = arith.constant 0 : index
    %c0_153 = arith.constant 0 : index
    %213 = vector.load %arg2[%212, %c1_151, %c0_152, %c0_153] : memref<8x3x8x32xf32, #tpu.memory_space<vmem>>, vector<1x1x8x32xf32>
    %214 = vector.shape_cast %213 : vector<1x1x8x32xf32> to vector<8x32xf32>
    %215 = arith.index_cast %c4_i32 : i32 to index
    %c2_154 = arith.constant 2 : index
    %c0_155 = arith.constant 0 : index
    %c0_156 = arith.constant 0 : index
    %216 = vector.load %arg2[%215, %c2_154, %c0_155, %c0_156] : memref<8x3x8x32xf32, #tpu.memory_space<vmem>>, vector<1x1x8x32xf32>
    %217 = vector.shape_cast %216 : vector<1x1x8x32xf32> to vector<8x32xf32>
    %218 = arith.addf %211, %202 : vector<8x32xf32>
    %219 = arith.negf %218 : vector<8x32xf32>
    %220 = math.exp %219 : vector<8x32xf32>
    %cst_157 = arith.constant 1.000000e+00 : f32
    %221 = vector.broadcast %cst_157 : f32 to vector<8x32xf32>
    %222 = arith.addf %221, %220 : vector<8x32xf32>
    %223 = arith.divf %221, %222 : vector<8x32xf32>
    %224 = arith.addf %214, %205 : vector<8x32xf32>
    %225 = arith.negf %224 : vector<8x32xf32>
    %226 = math.exp %225 : vector<8x32xf32>
    %cst_158 = arith.constant 1.000000e+00 : f32
    %227 = vector.broadcast %cst_158 : f32 to vector<8x32xf32>
    %228 = arith.addf %227, %226 : vector<8x32xf32>
    %229 = arith.divf %227, %228 : vector<8x32xf32>
    %c0_159 = arith.constant 0 : index
    %c0_160 = arith.constant 0 : index
    %230 = vector.load %arg5[%c0_159, %c0_160] : memref<8x32xf32, #tpu.memory_space<vmem>>, vector<8x32xf32>
    %231 = arith.addf %208, %230 : vector<8x32xf32>
    %232 = arith.mulf %223, %231 : vector<8x32xf32>
    %233 = arith.addf %217, %232 : vector<8x32xf32>
    %234 = math.tanh %233 : vector<8x32xf32>
    %cst_161 = arith.constant 1.000000e+00 : f32
    %235 = vector.broadcast %cst_161 : f32 to vector<8x32xf32>
    %236 = arith.subf %235, %229 : vector<8x32xf32>
    %237 = arith.mulf %236, %234 : vector<8x32xf32>
    %238 = arith.mulf %229, %199 : vector<8x32xf32>
    %239 = arith.addf %237, %238 : vector<8x32xf32>
    %c0_162 = arith.constant 0 : index
    %c0_163 = arith.constant 0 : index
    %240 = vector.load %arg8[%c0_162, %c0_163] : memref<8x32xf32, #tpu.memory_space<vmem>>, vector<8x32xf32>
    tpu.vector_store %arg8[%c0_162, %c0_163], %239 {strides = array<i32>} : memref<8x32xf32, #tpu.memory_space<vmem>>, vector<8x32xf32>,
    %c0_164 = arith.constant 0 : index
    %c0_165 = arith.constant 0 : index
    %241 = vector.load %arg6[%c0_164, %c0_165] : memref<8x32xf32, #tpu.memory_space<vmem>>, vector<8x32xf32>
    %242 = arith.mulf %239, %241 : vector<8x32xf32>
    %cst_166 = arith.constant dense<0.000000e+00> : vector<8xf32>
    %243 = vector.multi_reduction <add>, %242, %cst_166 [1] : vector<8x32xf32> to vector<8xf32>
    %244 = arith.index_cast %c4_i32 : i32 to index
    %c0_167 = arith.constant 0 : index
    %245 = vector.load %arg7[%244, %c0_167] : memref<8x8xf32, #tpu.memory_space<vmem>>, vector<1x8xf32>
    %246 = vector.shape_cast %245 : vector<1x8xf32> to vector<8xf32>
    %247 = vector.shape_cast %243 : vector<8xf32> to vector<1x8xf32>
    tpu.vector_store %arg7[%244, %c0_167], %247 {strides = array<i32>} : memref<8x8xf32, #tpu.memory_space<vmem>>, vector<1x8xf32>,
    %c5_i32 = arith.constant 5 : i32
    %c0_168 = arith.constant 0 : index
    %c0_169 = arith.constant 0 : index
    %248 = vector.load %arg8[%c0_168, %c0_169] : memref<8x32xf32, #tpu.memory_space<vmem>>, vector<8x32xf32>
    %c0_170 = arith.constant 0 : index
    %c0_171 = arith.constant 0 : index
    %c0_172 = arith.constant 0 : index
    %249 = vector.load %arg4[%c0_170, %c0_171, %c0_172] : memref<3x32x32xf32, #tpu.memory_space<vmem>>, vector<1x32x32xf32>
    %250 = vector.shape_cast %249 : vector<1x32x32xf32> to vector<32x32xf32>
    %cst_173 = arith.constant dense<0.000000e+00> : vector<8x32xf32>
    %251 = tpu.matmul %248, %250, %cst_173 {dimension_numbers = #tpu.dot_dimension_numbers<[1], [0], [0], [1], [0, 0, 1, 1], [], []>} : vector<8x32xf32>, vector<32x32xf32>, vector<8x32xf32> -> vector<8x32xf32>
    %c1_174 = arith.constant 1 : index
    %c0_175 = arith.constant 0 : index
    %c0_176 = arith.constant 0 : index
    %252 = vector.load %arg4[%c1_174, %c0_175, %c0_176] : memref<3x32x32xf32, #tpu.memory_space<vmem>>, vector<1x32x32xf32>
    %253 = vector.shape_cast %252 : vector<1x32x32xf32> to vector<32x32xf32>
    %cst_177 = arith.constant dense<0.000000e+00> : vector<8x32xf32>
    %254 = tpu.matmul %248, %253, %cst_177 {dimension_numbers = #tpu.dot_dimension_numbers<[1], [0], [0], [1], [0, 0, 1, 1], [], []>} : vector<8x32xf32>, vector<32x32xf32>, vector<8x32xf32> -> vector<8x32xf32>
    %c2_178 = arith.constant 2 : index
    %c0_179 = arith.constant 0 : index
    %c0_180 = arith.constant 0 : index
    %255 = vector.load %arg4[%c2_178, %c0_179, %c0_180] : memref<3x32x32xf32, #tpu.memory_space<vmem>>, vector<1x32x32xf32>
    %256 = vector.shape_cast %255 : vector<1x32x32xf32> to vector<32x32xf32>
    %cst_181 = arith.constant dense<0.000000e+00> : vector<8x32xf32>
    %257 = tpu.matmul %248, %256, %cst_181 {dimension_numbers = #tpu.dot_dimension_numbers<[1], [0], [0], [1], [0, 0, 1, 1], [], []>} : vector<8x32xf32>, vector<32x32xf32>, vector<8x32xf32> -> vector<8x32xf32>
    %258 = arith.index_cast %c5_i32 : i32 to index
    %c0_182 = arith.constant 0 : index
    %c0_183 = arith.constant 0 : index
    %c0_184 = arith.constant 0 : index
    %259 = vector.load %arg2[%258, %c0_182, %c0_183, %c0_184] : memref<8x3x8x32xf32, #tpu.memory_space<vmem>>, vector<1x1x8x32xf32>
    %260 = vector.shape_cast %259 : vector<1x1x8x32xf32> to vector<8x32xf32>
    %261 = arith.index_cast %c5_i32 : i32 to index
    %c1_185 = arith.constant 1 : index
    %c0_186 = arith.constant 0 : index
    %c0_187 = arith.constant 0 : index
    %262 = vector.load %arg2[%261, %c1_185, %c0_186, %c0_187] : memref<8x3x8x32xf32, #tpu.memory_space<vmem>>, vector<1x1x8x32xf32>
    %263 = vector.shape_cast %262 : vector<1x1x8x32xf32> to vector<8x32xf32>
    %264 = arith.index_cast %c5_i32 : i32 to index
    %c2_188 = arith.constant 2 : index
    %c0_189 = arith.constant 0 : index
    %c0_190 = arith.constant 0 : index
    %265 = vector.load %arg2[%264, %c2_188, %c0_189, %c0_190] : memref<8x3x8x32xf32, #tpu.memory_space<vmem>>, vector<1x1x8x32xf32>
    %266 = vector.shape_cast %265 : vector<1x1x8x32xf32> to vector<8x32xf32>
    %267 = arith.addf %260, %251 : vector<8x32xf32>
    %268 = arith.negf %267 : vector<8x32xf32>
    %269 = math.exp %268 : vector<8x32xf32>
    %cst_191 = arith.constant 1.000000e+00 : f32
    %270 = vector.broadcast %cst_191 : f32 to vector<8x32xf32>
    %271 = arith.addf %270, %269 : vector<8x32xf32>
    %272 = arith.divf %270, %271 : vector<8x32xf32>
    %273 = arith.addf %263, %254 : vector<8x32xf32>
    %274 = arith.negf %273 : vector<8x32xf32>
    %275 = math.exp %274 : vector<8x32xf32>
    %cst_192 = arith.constant 1.000000e+00 : f32
    %276 = vector.broadcast %cst_192 : f32 to vector<8x32xf32>
    %277 = arith.addf %276, %275 : vector<8x32xf32>
    %278 = arith.divf %276, %277 : vector<8x32xf32>
    %c0_193 = arith.constant 0 : index
    %c0_194 = arith.constant 0 : index
    %279 = vector.load %arg5[%c0_193, %c0_194] : memref<8x32xf32, #tpu.memory_space<vmem>>, vector<8x32xf32>
    %280 = arith.addf %257, %279 : vector<8x32xf32>
    %281 = arith.mulf %272, %280 : vector<8x32xf32>
    %282 = arith.addf %266, %281 : vector<8x32xf32>
    %283 = math.tanh %282 : vector<8x32xf32>
    %cst_195 = arith.constant 1.000000e+00 : f32
    %284 = vector.broadcast %cst_195 : f32 to vector<8x32xf32>
    %285 = arith.subf %284, %278 : vector<8x32xf32>
    %286 = arith.mulf %285, %283 : vector<8x32xf32>
    %287 = arith.mulf %278, %248 : vector<8x32xf32>
    %288 = arith.addf %286, %287 : vector<8x32xf32>
    %c0_196 = arith.constant 0 : index
    %c0_197 = arith.constant 0 : index
    %289 = vector.load %arg8[%c0_196, %c0_197] : memref<8x32xf32, #tpu.memory_space<vmem>>, vector<8x32xf32>
    tpu.vector_store %arg8[%c0_196, %c0_197], %288 {strides = array<i32>} : memref<8x32xf32, #tpu.memory_space<vmem>>, vector<8x32xf32>,
    %c0_198 = arith.constant 0 : index
    %c0_199 = arith.constant 0 : index
    %290 = vector.load %arg6[%c0_198, %c0_199] : memref<8x32xf32, #tpu.memory_space<vmem>>, vector<8x32xf32>
    %291 = arith.mulf %288, %290 : vector<8x32xf32>
    %cst_200 = arith.constant dense<0.000000e+00> : vector<8xf32>
    %292 = vector.multi_reduction <add>, %291, %cst_200 [1] : vector<8x32xf32> to vector<8xf32>
    %293 = arith.index_cast %c5_i32 : i32 to index
    %c0_201 = arith.constant 0 : index
    %294 = vector.load %arg7[%293, %c0_201] : memref<8x8xf32, #tpu.memory_space<vmem>>, vector<1x8xf32>
    %295 = vector.shape_cast %294 : vector<1x8xf32> to vector<8xf32>
    %296 = vector.shape_cast %292 : vector<8xf32> to vector<1x8xf32>
    tpu.vector_store %arg7[%293, %c0_201], %296 {strides = array<i32>} : memref<8x8xf32, #tpu.memory_space<vmem>>, vector<1x8xf32>,
    %c6_i32 = arith.constant 6 : i32
    %c0_202 = arith.constant 0 : index
    %c0_203 = arith.constant 0 : index
    %297 = vector.load %arg8[%c0_202, %c0_203] : memref<8x32xf32, #tpu.memory_space<vmem>>, vector<8x32xf32>
    %c0_204 = arith.constant 0 : index
    %c0_205 = arith.constant 0 : index
    %c0_206 = arith.constant 0 : index
    %298 = vector.load %arg4[%c0_204, %c0_205, %c0_206] : memref<3x32x32xf32, #tpu.memory_space<vmem>>, vector<1x32x32xf32>
    %299 = vector.shape_cast %298 : vector<1x32x32xf32> to vector<32x32xf32>
    %cst_207 = arith.constant dense<0.000000e+00> : vector<8x32xf32>
    %300 = tpu.matmul %297, %299, %cst_207 {dimension_numbers = #tpu.dot_dimension_numbers<[1], [0], [0], [1], [0, 0, 1, 1], [], []>} : vector<8x32xf32>, vector<32x32xf32>, vector<8x32xf32> -> vector<8x32xf32>
    %c1_208 = arith.constant 1 : index
    %c0_209 = arith.constant 0 : index
    %c0_210 = arith.constant 0 : index
    %301 = vector.load %arg4[%c1_208, %c0_209, %c0_210] : memref<3x32x32xf32, #tpu.memory_space<vmem>>, vector<1x32x32xf32>
    %302 = vector.shape_cast %301 : vector<1x32x32xf32> to vector<32x32xf32>
    %cst_211 = arith.constant dense<0.000000e+00> : vector<8x32xf32>
    %303 = tpu.matmul %297, %302, %cst_211 {dimension_numbers = #tpu.dot_dimension_numbers<[1], [0], [0], [1], [0, 0, 1, 1], [], []>} : vector<8x32xf32>, vector<32x32xf32>, vector<8x32xf32> -> vector<8x32xf32>
    %c2_212 = arith.constant 2 : index
    %c0_213 = arith.constant 0 : index
    %c0_214 = arith.constant 0 : index
    %304 = vector.load %arg4[%c2_212, %c0_213, %c0_214] : memref<3x32x32xf32, #tpu.memory_space<vmem>>, vector<1x32x32xf32>
    %305 = vector.shape_cast %304 : vector<1x32x32xf32> to vector<32x32xf32>
    %cst_215 = arith.constant dense<0.000000e+00> : vector<8x32xf32>
    %306 = tpu.matmul %297, %305, %cst_215 {dimension_numbers = #tpu.dot_dimension_numbers<[1], [0], [0], [1], [0, 0, 1, 1], [], []>} : vector<8x32xf32>, vector<32x32xf32>, vector<8x32xf32> -> vector<8x32xf32>
    %307 = arith.index_cast %c6_i32 : i32 to index
    %c0_216 = arith.constant 0 : index
    %c0_217 = arith.constant 0 : index
    %c0_218 = arith.constant 0 : index
    %308 = vector.load %arg2[%307, %c0_216, %c0_217, %c0_218] : memref<8x3x8x32xf32, #tpu.memory_space<vmem>>, vector<1x1x8x32xf32>
    %309 = vector.shape_cast %308 : vector<1x1x8x32xf32> to vector<8x32xf32>
    %310 = arith.index_cast %c6_i32 : i32 to index
    %c1_219 = arith.constant 1 : index
    %c0_220 = arith.constant 0 : index
    %c0_221 = arith.constant 0 : index
    %311 = vector.load %arg2[%310, %c1_219, %c0_220, %c0_221] : memref<8x3x8x32xf32, #tpu.memory_space<vmem>>, vector<1x1x8x32xf32>
    %312 = vector.shape_cast %311 : vector<1x1x8x32xf32> to vector<8x32xf32>
    %313 = arith.index_cast %c6_i32 : i32 to index
    %c2_222 = arith.constant 2 : index
    %c0_223 = arith.constant 0 : index
    %c0_224 = arith.constant 0 : index
    %314 = vector.load %arg2[%313, %c2_222, %c0_223, %c0_224] : memref<8x3x8x32xf32, #tpu.memory_space<vmem>>, vector<1x1x8x32xf32>
    %315 = vector.shape_cast %314 : vector<1x1x8x32xf32> to vector<8x32xf32>
    %316 = arith.addf %309, %300 : vector<8x32xf32>
    %317 = arith.negf %316 : vector<8x32xf32>
    %318 = math.exp %317 : vector<8x32xf32>
    %cst_225 = arith.constant 1.000000e+00 : f32
    %319 = vector.broadcast %cst_225 : f32 to vector<8x32xf32>
    %320 = arith.addf %319, %318 : vector<8x32xf32>
    %321 = arith.divf %319, %320 : vector<8x32xf32>
    %322 = arith.addf %312, %303 : vector<8x32xf32>
    %323 = arith.negf %322 : vector<8x32xf32>
    %324 = math.exp %323 : vector<8x32xf32>
    %cst_226 = arith.constant 1.000000e+00 : f32
    %325 = vector.broadcast %cst_226 : f32 to vector<8x32xf32>
    %326 = arith.addf %325, %324 : vector<8x32xf32>
    %327 = arith.divf %325, %326 : vector<8x32xf32>
    %c0_227 = arith.constant 0 : index
    %c0_228 = arith.constant 0 : index
    %328 = vector.load %arg5[%c0_227, %c0_228] : memref<8x32xf32, #tpu.memory_space<vmem>>, vector<8x32xf32>
    %329 = arith.addf %306, %328 : vector<8x32xf32>
    %330 = arith.mulf %321, %329 : vector<8x32xf32>
    %331 = arith.addf %315, %330 : vector<8x32xf32>
    %332 = math.tanh %331 : vector<8x32xf32>
    %cst_229 = arith.constant 1.000000e+00 : f32
    %333 = vector.broadcast %cst_229 : f32 to vector<8x32xf32>
    %334 = arith.subf %333, %327 : vector<8x32xf32>
    %335 = arith.mulf %334, %332 : vector<8x32xf32>
    %336 = arith.mulf %327, %297 : vector<8x32xf32>
    %337 = arith.addf %335, %336 : vector<8x32xf32>
    %c0_230 = arith.constant 0 : index
    %c0_231 = arith.constant 0 : index
    %338 = vector.load %arg8[%c0_230, %c0_231] : memref<8x32xf32, #tpu.memory_space<vmem>>, vector<8x32xf32>
    tpu.vector_store %arg8[%c0_230, %c0_231], %337 {strides = array<i32>} : memref<8x32xf32, #tpu.memory_space<vmem>>, vector<8x32xf32>,
    %c0_232 = arith.constant 0 : index
    %c0_233 = arith.constant 0 : index
    %339 = vector.load %arg6[%c0_232, %c0_233] : memref<8x32xf32, #tpu.memory_space<vmem>>, vector<8x32xf32>
    %340 = arith.mulf %337, %339 : vector<8x32xf32>
    %cst_234 = arith.constant dense<0.000000e+00> : vector<8xf32>
    %341 = vector.multi_reduction <add>, %340, %cst_234 [1] : vector<8x32xf32> to vector<8xf32>
    %342 = arith.index_cast %c6_i32 : i32 to index
    %c0_235 = arith.constant 0 : index
    %343 = vector.load %arg7[%342, %c0_235] : memref<8x8xf32, #tpu.memory_space<vmem>>, vector<1x8xf32>
    %344 = vector.shape_cast %343 : vector<1x8xf32> to vector<8xf32>
    %345 = vector.shape_cast %341 : vector<8xf32> to vector<1x8xf32>
    tpu.vector_store %arg7[%342, %c0_235], %345 {strides = array<i32>} : memref<8x8xf32, #tpu.memory_space<vmem>>, vector<1x8xf32>,
    %c7_i32 = arith.constant 7 : i32
    %c0_236 = arith.constant 0 : index
    %c0_237 = arith.constant 0 : index
    %346 = vector.load %arg8[%c0_236, %c0_237] : memref<8x32xf32, #tpu.memory_space<vmem>>, vector<8x32xf32>
    %c0_238 = arith.constant 0 : index
    %c0_239 = arith.constant 0 : index
    %c0_240 = arith.constant 0 : index
    %347 = vector.load %arg4[%c0_238, %c0_239, %c0_240] : memref<3x32x32xf32, #tpu.memory_space<vmem>>, vector<1x32x32xf32>
    %348 = vector.shape_cast %347 : vector<1x32x32xf32> to vector<32x32xf32>
    %cst_241 = arith.constant dense<0.000000e+00> : vector<8x32xf32>
    %349 = tpu.matmul %346, %348, %cst_241 {dimension_numbers = #tpu.dot_dimension_numbers<[1], [0], [0], [1], [0, 0, 1, 1], [], []>} : vector<8x32xf32>, vector<32x32xf32>, vector<8x32xf32> -> vector<8x32xf32>
    %c1_242 = arith.constant 1 : index
    %c0_243 = arith.constant 0 : index
    %c0_244 = arith.constant 0 : index
    %350 = vector.load %arg4[%c1_242, %c0_243, %c0_244] : memref<3x32x32xf32, #tpu.memory_space<vmem>>, vector<1x32x32xf32>
    %351 = vector.shape_cast %350 : vector<1x32x32xf32> to vector<32x32xf32>
    %cst_245 = arith.constant dense<0.000000e+00> : vector<8x32xf32>
    %352 = tpu.matmul %346, %351, %cst_245 {dimension_numbers = #tpu.dot_dimension_numbers<[1], [0], [0], [1], [0, 0, 1, 1], [], []>} : vector<8x32xf32>, vector<32x32xf32>, vector<8x32xf32> -> vector<8x32xf32>
    %c2_246 = arith.constant 2 : index
    %c0_247 = arith.constant 0 : index
    %c0_248 = arith.constant 0 : index
    %353 = vector.load %arg4[%c2_246, %c0_247, %c0_248] : memref<3x32x32xf32, #tpu.memory_space<vmem>>, vector<1x32x32xf32>
    %354 = vector.shape_cast %353 : vector<1x32x32xf32> to vector<32x32xf32>
    %cst_249 = arith.constant dense<0.000000e+00> : vector<8x32xf32>
    %355 = tpu.matmul %346, %354, %cst_249 {dimension_numbers = #tpu.dot_dimension_numbers<[1], [0], [0], [1], [0, 0, 1, 1], [], []>} : vector<8x32xf32>, vector<32x32xf32>, vector<8x32xf32> -> vector<8x32xf32>
    %356 = arith.index_cast %c7_i32 : i32 to index
    %c0_250 = arith.constant 0 : index
    %c0_251 = arith.constant 0 : index
    %c0_252 = arith.constant 0 : index
    %357 = vector.load %arg2[%356, %c0_250, %c0_251, %c0_252] : memref<8x3x8x32xf32, #tpu.memory_space<vmem>>, vector<1x1x8x32xf32>
    %358 = vector.shape_cast %357 : vector<1x1x8x32xf32> to vector<8x32xf32>
    %359 = arith.index_cast %c7_i32 : i32 to index
    %c1_253 = arith.constant 1 : index
    %c0_254 = arith.constant 0 : index
    %c0_255 = arith.constant 0 : index
    %360 = vector.load %arg2[%359, %c1_253, %c0_254, %c0_255] : memref<8x3x8x32xf32, #tpu.memory_space<vmem>>, vector<1x1x8x32xf32>
    %361 = vector.shape_cast %360 : vector<1x1x8x32xf32> to vector<8x32xf32>
    %362 = arith.index_cast %c7_i32 : i32 to index
    %c2_256 = arith.constant 2 : index
    %c0_257 = arith.constant 0 : index
    %c0_258 = arith.constant 0 : index
    %363 = vector.load %arg2[%362, %c2_256, %c0_257, %c0_258] : memref<8x3x8x32xf32, #tpu.memory_space<vmem>>, vector<1x1x8x32xf32>
    %364 = vector.shape_cast %363 : vector<1x1x8x32xf32> to vector<8x32xf32>
    %365 = arith.addf %358, %349 : vector<8x32xf32>
    %366 = arith.negf %365 : vector<8x32xf32>
    %367 = math.exp %366 : vector<8x32xf32>
    %cst_259 = arith.constant 1.000000e+00 : f32
    %368 = vector.broadcast %cst_259 : f32 to vector<8x32xf32>
    %369 = arith.addf %368, %367 : vector<8x32xf32>
    %370 = arith.divf %368, %369 : vector<8x32xf32>
    %371 = arith.addf %361, %352 : vector<8x32xf32>
    %372 = arith.negf %371 : vector<8x32xf32>
    %373 = math.exp %372 : vector<8x32xf32>
    %cst_260 = arith.constant 1.000000e+00 : f32
    %374 = vector.broadcast %cst_260 : f32 to vector<8x32xf32>
    %375 = arith.addf %374, %373 : vector<8x32xf32>
    %376 = arith.divf %374, %375 : vector<8x32xf32>
    %c0_261 = arith.constant 0 : index
    %c0_262 = arith.constant 0 : index
    %377 = vector.load %arg5[%c0_261, %c0_262] : memref<8x32xf32, #tpu.memory_space<vmem>>, vector<8x32xf32>
    %378 = arith.addf %355, %377 : vector<8x32xf32>
    %379 = arith.mulf %370, %378 : vector<8x32xf32>
    %380 = arith.addf %364, %379 : vector<8x32xf32>
    %381 = math.tanh %380 : vector<8x32xf32>
    %cst_263 = arith.constant 1.000000e+00 : f32
    %382 = vector.broadcast %cst_263 : f32 to vector<8x32xf32>
    %383 = arith.subf %382, %376 : vector<8x32xf32>
    %384 = arith.mulf %383, %381 : vector<8x32xf32>
    %385 = arith.mulf %376, %346 : vector<8x32xf32>
    %386 = arith.addf %384, %385 : vector<8x32xf32>
    %c0_264 = arith.constant 0 : index
    %c0_265 = arith.constant 0 : index
    %387 = vector.load %arg8[%c0_264, %c0_265] : memref<8x32xf32, #tpu.memory_space<vmem>>, vector<8x32xf32>
    tpu.vector_store %arg8[%c0_264, %c0_265], %386 {strides = array<i32>} : memref<8x32xf32, #tpu.memory_space<vmem>>, vector<8x32xf32>,
    %c0_266 = arith.constant 0 : index
    %c0_267 = arith.constant 0 : index
    %388 = vector.load %arg6[%c0_266, %c0_267] : memref<8x32xf32, #tpu.memory_space<vmem>>, vector<8x32xf32>
    %389 = arith.mulf %386, %388 : vector<8x32xf32>
    %cst_268 = arith.constant dense<0.000000e+00> : vector<8xf32>
    %390 = vector.multi_reduction <add>, %389, %cst_268 [1] : vector<8x32xf32> to vector<8xf32>
    %391 = arith.index_cast %c7_i32 : i32 to index
    %c0_269 = arith.constant 0 : index
    %392 = vector.load %arg7[%391, %c0_269] : memref<8x8xf32, #tpu.memory_space<vmem>>, vector<1x8xf32>
    %393 = vector.shape_cast %392 : vector<1x8xf32> to vector<8xf32>
    %394 = vector.shape_cast %390 : vector<8xf32> to vector<1x8xf32>
    tpu.vector_store %arg7[%391, %c0_269], %394 {strides = array<i32>} : memref<8x8xf32, #tpu.memory_space<vmem>>, vector<1x8xf32>,
    %c8_i32 = arith.constant 8 : i32
    return
  }
  func.func @transform_0(%arg0: i32, %arg1: i32) -> (i32, i32, i32, i32) {
    %c0_i32 = arith.constant 0 : i32
    %c0_i32_0 = arith.constant 0 : i32
    %c0_i32_1 = arith.constant 0 : i32
    return %arg1, %c0_i32, %arg0, %c0_i32_0 : i32, i32, i32, i32
  }
  func.func @transform_1(%arg0: i32, %arg1: i32) -> (i32, i32) {
    %c0_i32 = arith.constant 0 : i32
    %c0_i32_0 = arith.constant 0 : i32
    return %arg0, %c0_i32 : i32, i32
  }
  func.func @transform_2(%arg0: i32, %arg1: i32) -> (i32, i32, i32) {
    %c0_i32 = arith.constant 0 : i32
    %c0_i32_0 = arith.constant 0 : i32
    %c0_i32_1 = arith.constant 0 : i32
    %c0_i32_2 = arith.constant 0 : i32
    return %c0_i32, %c0_i32_0, %c0_i32_1 : i32, i32, i32
  }
  func.func @transform_3(%arg0: i32, %arg1: i32) -> (i32, i32) {
    %c0_i32 = arith.constant 0 : i32
    %c0_i32_0 = arith.constant 0 : i32
    %c0_i32_1 = arith.constant 0 : i32
    return %c0_i32, %c0_i32_0 : i32, i32
  }
  func.func @transform_4(%arg0: i32, %arg1: i32) -> (i32, i32) {
    %c0_i32 = arith.constant 0 : i32
    %c0_i32_0 = arith.constant 0 : i32
    %c0_i32_1 = arith.constant 0 : i32
    return %c0_i32, %c0_i32_0 : i32, i32
  }
  func.func @transform_5(%arg0: i32, %arg1: i32) -> (i32, i32) {
    %c0_i32 = arith.constant 0 : i32
    return %arg1, %arg0 : i32, i32
  }
}

</mosaic_0001>

<bundles_post_ra>
// kernel: sessionwise_gru_forward.1
= control target key start
LH: loop header
LB: loop body
LE: loop exit
PB: predicated region body
PF: predicated region fallthrough
CT: control target
= control target key end

     0   :  { %vm25_vm0 = vcmask 261120   ;;  %v2910_v0 = vmov 0.0|0.0   ;;  %vm2911_vm1 = vmmov 0   ;;  %v2912_v4 = vmov 0.0   ;;  %s3346_s2 = inlined_call_operand.vmem [shape: f32[3,32,32], index: 2, kind: input, shape index: {}]   ;;  %s3347_s1 = inlined_call_operand.vmem [shape: f32[8,32], index: 1, kind: input, shape index: {}]   ;;  %s3348_s0 = inlined_call_operand.vmem [shape: f32[8,3,8,32], index: 0, kind: input, shape index: {}]   ;;  %s3349_s3 = inlined_call_operand.vmem [shape: f32[8,32], index: 3, kind: input, shape index: {}]   ;;  %s3350_s4 = inlined_call_operand.vmem [shape: f32[8,32], index: 4, kind: input, shape index: {}]   ;;  %s3351_s5 = inlined_call_operand.vmem [shape: f32[8,8], index: 5, kind: output, shape index: {}]  }
   0x1   :  { %2683 = vmatprep.subr.bf16.mxu0 %v2910_v0  ;;  %v28_v1 = vld [vmem:[%s3346_s2] sm:$0xff]  ;;  %v29_v2 = vld [vmem:[%s3346_s2 + $0x8] sm:$0xff]  ;;  %v30_v3 = vld [vmem:[%s3346_s2 + $0x10] sm:$0xff]  ;;  %2427 = vmatprep.mubr.msk.f32.mxu0 %vm2911_vm1, %v2912_v4  ;;  %v290_v54 = vlaneseq  ;;  %vm297_vm2 = vcmask 57344  }
   0x2   :  { %v2955_v5 = vpack.c.bf16 %v29_v2, %v28_v1  ;;  %v31_v6 = vld [vmem:[%s3346_s2 + $0x18] sm:$0xff]  ;;  %v24_v7 = vld [vmem:[%s3347_s1] sm:$0xff]  ;;  %2689 = vmatprep.subr.bf16.mxu1 %v2910_v0  ;;  %2438 = vmatprep.mubr.msk.f32.mxu1 %vm2911_vm1, %v2912_v4  ;;  %v2174_v9 = vld [vmem:[%s3346_s2 + $0x28] sm:$0xff] }
   0x3   :  { %v2173_v8 = vld [vmem:[%s3346_s2 + $0x20] sm:$0xff]  ;;  %26 = vst.msk [vmem:[#allocation2] sm:$0xff] %vm25_vm0, %v24_v7  ;;  %v2175_v10 = vld [vmem:[%s3346_s2 + $0x30] sm:$0xff]  ;;  %v2176_v11 = vld [vmem:[%s3346_s2 + $0x38] sm:$0xff]  ;;  %v2980_v12 = vpack.c.bf16 %v31_v6, %v30_v3  ;;  %v291_v55 = vand.u32 127, %v290_v54  ;;  %v293_v56 = vshrl.u32 %v290_v54, 7 }
   0x4   :  { %2685 = vmatpush3.bf16.msra.mxu0 %v2955_v5  ;;  %v2982_v13 = vpack.c.bf16 %v2174_v9, %v2173_v8  ;;  %v2178_v14 = vld [vmem:[%s3346_s2 + $0x40] sm:$0xff]  ;;  %v2179_v15 = vld [vmem:[%s3346_s2 + $0x48] sm:$0xff]  ;;  %v2992_v16 = vpack.c.bf16 %v2176_v11, %v2175_v10  ;;  %v2180_v18 = vld [vmem:[%s3346_s2 + $0x50] sm:$0xff] }
   0x5   :  { %2686 = vmatprep.subr.bf16.mxu0 %v2910_v0  ;;  %v2996_v17 = vpack.c.bf16 %v2179_v15, %v2178_v14  ;;  %v2181_v19 = vld [vmem:[%s3346_s2 + $0x58] sm:$0xff]  ;;  %v186_v22 = vld [vmem:[%s3348_s0] sm:$0xff]  ;;  %v2182_v24 = vld [vmem:[%s3348_s0 + $0x8] sm:$0xff]  ;;  %v3074_v57 = vsub.s32 %v291_v55, %v293_v56 }
   0x6   :  { %2691 = vmatpush3.bf16.msra.mxu1 %v2982_v13  ;;  %v3009_v21 = vpack.c.bf16 %v2181_v19, %v2180_v18  ;;  %v3039_v37 = vld [vmem:[%s3349_s3] sm:$0xff]  ;;  %v2183_v41 = vld [vmem:[%s3348_s0 + $0x10] sm:$0xff]  ;;  %v2197_v60 = vld [vmem:[%s3348_s0 + $0x18] sm:$0xff] }
   0x7   :  { %2692 = vmatprep.subr.bf16.mxu1 %v2910_v0  ;;  %v3048_v49 = vld [vmem:[%s3350_s4] sm:$0xff] }
   0x8   :  { %2688 = vmatpush3.bf16.msra.mxu0 %v2980_v12  ;;  %v2198_v1 = vld [vmem:[%s3348_s0 + $0x20] sm:$0xff] }
   0x9   :  { %2695 = vmatprep.subr.bf16.mxu0 %v2910_v0  ;;  %v2215_v56 = vld [vmem:[%s3348_s0 + $0x40] sm:$0xff] }
   0xa   :  { %v27_v20 = vld [vmem:[#allocation2] sm:$0xff]  ;;  %2694 = vmatpush3.bf16.msra.mxu1 %v2992_v16 }
   0xb   :  { %2428 = vmatmul.mubr.msk.f32.vlgmr.msra.gmra.mrb[0].mxu0 %vm25_vm0, %v27_v20  ;;  %2701 = vmatprep.subr.bf16.mxu1 %v2910_v0 }
   0xc   :  { %2697 = vmatpush3.bf16.msra.mxu0 %v2996_v17  ;;  %2449 = vmatprep.mubr.msk.f32.mxu0 %vm2911_vm1, %v2912_v4 }
   0xd   :  { %2439 = vmatmul.mubr.msk.f32.vlgmr.msra.gmra.mrb[0].mxu1 %vm25_vm0, %v27_v20  ;;  %2698 = vmatprep.subr.bf16.mxu0 %v2910_v0 }
   0xe   :  { %2703 = vmatpush3.bf16.msra.mxu1 %v2955_v5  ;;  %2460 = vmatprep.mubr.msk.f32.mxu1 %vm2911_vm1, %v2912_v4 }
   0xf   :  { %2704 = vmatprep.subr.bf16.mxu1 %v2910_v0 }
  0x10   :  { %2700 = vmatpush3.bf16.msra.mxu0 %v3009_v21 }
  0x11   :  { %2707 = vmatprep.subr.bf16.mxu0 %v2910_v0 }
  0x12   :  { %2706 = vmatpush3.bf16.msra.mxu1 %v2980_v12 }
  0x13   :  { %2450 = vmatmul.mubr.msk.f32.vlgmr.msra.gmra.mrb[2].mxu0 %vm25_vm0, %v27_v20  ;;  %2713 = vmatprep.subr.bf16.mxu1 %v2910_v0 }
  0x14   :  { %2709 = vmatpush3.bf16.msra.mxu0 %v2982_v13  ;;  %2471 = vmatprep.mubr.msk.f32.mxu0 %vm2911_vm1, %v2912_v4 }
  0x15   :  { %2710 = vmatprep.subr.bf16.mxu0 %v2910_v0 }
  0x18   :  { %2712 = vmatpush3.bf16.msra.mxu0 %v2992_v16 }
  0x19   :  { %2719 = vmatprep.subr.bf16.mxu0 %v2910_v0 }
  0xde   :  { %v102_v23 = vpop.f32.mrb[0].mxu0 }
  0xdf   :  { %v191_v25 = vadd.f32 %v186_v22, %v102_v23  ;;  %v2429_v26 = vpop.f32.mrb[1].mxu0  ;;  %v2199_v22 = vld [vmem:[%s3348_s0 + $0x28] sm:$0xff] }
  0xe0   :  { %v177_v27 = vpop.f32.mrb[0].mxu1 }
  0xe1   :  { %v2184_v28 = vmul.f32 -1.442695, %v191_v25  ;;  %v198_v29 = vadd.f32 %v2182_v24, %v177_v27  ;;  %v2440_v30 = vpop.f32.mrb[1].mxu1 }
  0xe3   :  { %2830 = vpow2.f32 %v2184_v28  ;;  %v2185_v31 = vmul.f32 -1.442695, %v198_v29 }
  0xe5   :  { %2832 = vpow2.f32 %v2185_v31 }
  0xe6   :  { %v272_v32 = vpop.f32.mrb[2].mxu0 }
  0xe7   :  { %v2451_v33 = vpop.f32.mrb[3].mxu0  ;;  %v273_v39 = vadd.f32 %v272_v32, %v3039_v37 }
  0xed   :  { %v2831_v34 = vpop.eup %2830 }
  0xee   :  { %v195_v35 = vadd.f32 1.0, %v2831_v34 }
  0xef   :  { %v2833_v36 = vpop.eup %2832 }
  0xf0   :  { %2834 = vrcp.f32 %v195_v35  ;;  %v202_v38 = vadd.f32 1.0, %v2833_v36  ;;  %v2213_v36 = vld [vmem:[%s3348_s0 + $0x30] sm:$0xff] }
  0xf2   :  { %2836 = vrcp.f32 %v202_v38 }
  0xfa   :  { %v2835_v40 = vpop.eup %2834 }
  0xfb   :  { %v276_v42 = vmul.f32 %v2835_v40, %v273_v39 }
  0xfc   :  { %v2837_v44 = vpop.eup %2836 }
  0xfd   :  { %v277_v43 = vadd.f32 %v2183_v41, %v276_v42  ;;  %v279_v45 = vsub.f32 1.0, %v2837_v44  ;;  %v281_v48 = vmul.f32 %v2837_v44, %v27_v20  ;;  %v2214_v41 = vld [vmem:[%s3348_s0 + $0x38] sm:$0xff] }
  0xff   :  { %2838 = vtanh.f32 %v277_v43 }
 0x109   :  { %v2839_v46 = vpop.eup %2838 }
 0x10a   :  { %v280_v47 = vmul.f32 %v2839_v46, %v279_v45 }
 0x10c   :  { %v282_v50 = vadd.f32 %v281_v48, %v280_v47 }
 0x10e   :  { %v285_v51 = vmul.f32 %v3048_v49, %v282_v50  ;;  %283 = vst.msk [vmem:[#allocation2] sm:$0xff] %vm25_vm0, %v282_v50 }
 0x110   :  { %v286_v52 = vsel %vm25_vm0, %v285_v51, 0.0 }
 0x111   :  { %287 = vadd.xlane.f32.xlu0 %v286_v52 }
 0x115   :  { %v299_v53 = vld [vmem:[#allocation2] sm:$0xff] }
 0x116   :  { %2461 = vmatmul.mubr.msk.f32.vlgmr.msra.gmra.mrb[2].mxu1 %vm25_vm0, %v299_v53  ;;  %2472 = vmatmul.mubr.msk.f32.vlgmr.msra.gmra.mrb[4].mxu0 %vm25_vm0, %v299_v53 }
 0x117   :  { %2715 = vmatpush3.bf16.msra.mxu1 %v2996_v17  ;;  %2482 = vmatprep.mubr.msk.f32.mxu1 %vm2911_vm1, %v2912_v4 }
 0x118   :  { %2716 = vmatprep.subr.bf16.mxu1 %v2910_v0  ;;  %2721 = vmatpush3.bf16.msra.mxu0 %v2955_v5 }
 0x119   :  { %2722 = vmatprep.subr.bf16.mxu0 %v2910_v0  ;;  %2493 = vmatprep.mubr.msk.f32.mxu0 %vm2911_vm1, %v2912_v4 }
 0x11b   :  { %2718 = vmatpush3.bf16.msra.mxu1 %v3009_v21 }
 0x11c   :  { %2725 = vmatprep.subr.bf16.mxu1 %v2910_v0  ;;  %2724 = vmatpush3.bf16.msra.mxu0 %v2980_v12 }
 0x11d   :  { %2731 = vmatprep.subr.bf16.mxu0 %v2910_v0 }
 0x11e   :  { %2483 = vmatmul.mubr.msk.f32.vlgmr.msra.gmra.mrb[4].mxu1 %vm25_vm0, %v299_v53 }
 0x11f   :  { %2727 = vmatpush3.bf16.msra.mxu1 %v2982_v13  ;;  %2504 = vmatprep.mubr.msk.f32.mxu1 %vm2911_vm1, %v2912_v4 }
 0x120   :  { %2728 = vmatprep.subr.bf16.mxu1 %v2910_v0 }
 0x123   :  { %2730 = vmatpush3.bf16.msra.mxu1 %v2992_v16 }
 0x124   :  { %2737 = vmatprep.subr.bf16.mxu1 %v2910_v0 }
 0x19e   :  { %v288_v58 = vpop.xlane.xlu0 %287 }
 0x19f   :  { %v295_v59 = vrot.slane %v288_v58, %v3074_v57 }
 0x1a1   :  { %298 = vst.msk [vmem:[%s3351_s5] sm:$0x1] %vm297_vm2, %v295_v59 }
 0x1e9   :  { %v373_v61 = vpop.f32.mrb[2].mxu1  ;;  %v447_v62 = vpop.f32.mrb[4].mxu0 }
 0x1ea   :  { %v461_v63 = vadd.f32 %v2197_v60, %v373_v61  ;;  %v2462_v2 = vpop.f32.mrb[3].mxu1  ;;  %v2473_v3 = vpop.f32.mrb[5].mxu0  ;;  %v468_v7 = vadd.f32 %v2198_v1, %v447_v62 }
 0x1ec   :  { %v2200_v6 = vmul.f32 -1.442695, %v461_v63  ;;  %v2201_v8 = vmul.f32 -1.442695, %v468_v7 }
 0x1ee   :  { %2840 = vpow2.f32 %v2200_v6 }
 0x1ef   :  { %2842 = vpow2.f32 %v2201_v8 }
 0x1f1   :  { %v542_v9 = vpop.f32.mrb[4].mxu1 }
 0x1f2   :  { %v2484_v10 = vpop.f32.mrb[5].mxu1  ;;  %v543_v19 = vadd.f32 %v542_v9, %v3039_v37 }
 0x1f3   :  { %v2229_v10 = vld [vmem:[%s3348_s0 + $0x48] sm:$0xff] }
 0x1f8   :  { %v2841_v11 = vpop.eup %2840 }
 0x1f9   :  { %v465_v14 = vadd.f32 1.0, %v2841_v11  ;;  %v2843_v15 = vpop.eup %2842 }
 0x1fa   :  { %v472_v18 = vadd.f32 1.0, %v2843_v15 }
 0x1fb   :  { %2844 = vrcp.f32 %v465_v14 }
 0x1fc   :  { %2846 = vrcp.f32 %v472_v18  ;;  %v2230_v18 = vld [vmem:[%s3348_s0 + $0x50] sm:$0xff] }
 0x205   :  { %v2845_v20 = vpop.eup %2844 }
 0x206   :  { %v546_v23 = vmul.f32 %v2845_v20, %v543_v19  ;;  %v2847_v25 = vpop.eup %2846 }
 0x207   :  { %v549_v26 = vsub.f32 1.0, %v2847_v25  ;;  %v551_v29 = vmul.f32 %v2847_v25, %v299_v53 }
 0x208   :  { %v547_v24 = vadd.f32 %v2199_v22, %v546_v23 }
 0x20a   :  { %2848 = vtanh.f32 %v547_v24 }
 0x214   :  { %v2849_v27 = vpop.eup %2848 }
 0x215   :  { %v550_v28 = vmul.f32 %v2849_v27, %v549_v26 }
 0x217   :  { %v552_v30 = vadd.f32 %v551_v29, %v550_v28 }
 0x219   :  { %v555_v31 = vmul.f32 %v552_v30, %v3048_v49  ;;  %553 = vst.msk [vmem:[#allocation2] sm:$0xff] %vm25_vm0, %v552_v30 }
 0x21b   :  { %v556_v32 = vsel %vm25_vm0, %v555_v31, 0.0 }
 0x21c   :  { %557 = vadd.xlane.f32.xlu0 %v556_v32 }
 0x220   :  { %v566_v33 = vld [vmem:[#allocation2] sm:$0xff] }
 0x221   :  { %2494 = vmatmul.mubr.msk.f32.vlgmr.msra.gmra.mrb[6].mxu0 %vm25_vm0, %v566_v33  ;;  %2505 = vmatmul.mubr.msk.f32.vlgmr.msra.gmra.mrb[6].mxu1 %vm25_vm0, %v566_v33 }
 0x222   :  { %2733 = vmatpush3.bf16.msra.mxu0 %v2996_v17  ;;  %2515 = vmatprep.mubr.msk.f32.mxu0 %vm2911_vm1, %v2912_v4 }
 0x223   :  { %2734 = vmatprep.subr.bf16.mxu0 %v2910_v0  ;;  %2739 = vmatpush3.bf16.msra.mxu1 %v2955_v5 }
 0x224   :  { %2740 = vmatprep.subr.bf16.mxu1 %v2910_v0  ;;  %2526 = vmatprep.mubr.msk.f32.mxu1 %vm2911_vm1, %v2912_v4 }
 0x226   :  { %2736 = vmatpush3.bf16.msra.mxu0 %v3009_v21 }
 0x227   :  { %2743 = vmatprep.subr.bf16.mxu0 %v2910_v0  ;;  %2742 = vmatpush3.bf16.msra.mxu1 %v2980_v12 }
 0x228   :  { %2749 = vmatprep.subr.bf16.mxu1 %v2910_v0 }
 0x229   :  { %2516 = vmatmul.mubr.msk.f32.vlgmr.msra.gmra.mrb[8].mxu0 %vm25_vm0, %v566_v33 }
 0x22a   :  { %2745 = vmatpush3.bf16.msra.mxu0 %v2982_v13  ;;  %2537 = vmatprep.mubr.msk.f32.mxu0 %vm2911_vm1, %v2912_v4 }
 0x22b   :  { %2746 = vmatprep.subr.bf16.mxu0 %v2910_v0 }
 0x22e   :  { %2748 = vmatpush3.bf16.msra.mxu0 %v2992_v16 }
 0x22f   :  { %2755 = vmatprep.subr.bf16.mxu0 %v2910_v0 }
 0x2a9   :  { %v558_v34 = vpop.xlane.xlu0 %557 }
 0x2aa   :  { %v563_v35 = vrot.slane %v558_v34, %v3074_v57 }
 0x2ac   :  { %565 = vst.msk [vmem:[%s3351_s5 + $0x1] sm:$0x1] %vm297_vm2, %v563_v35 }
 0x2f4   :  { %v640_v38 = vpop.f32.mrb[6].mxu0  ;;  %v714_v39 = vpop.f32.mrb[6].mxu1 }
 0x2f5   :  { %v728_v40 = vadd.f32 %v2213_v36, %v640_v38  ;;  %v2495_v42 = vpop.f32.mrb[7].mxu0  ;;  %v2506_v43 = vpop.f32.mrb[7].mxu1  ;;  %v735_v45 = vadd.f32 %v2214_v41, %v714_v39 }
 0x2f7   :  { %v2216_v44 = vmul.f32 -1.442695, %v728_v40  ;;  %v2217_v46 = vmul.f32 -1.442695, %v735_v45 }
 0x2f9   :  { %2850 = vpow2.f32 %v2216_v44 }
 0x2fa   :  { %2852 = vpow2.f32 %v2217_v46 }
 0x2fc   :  { %v809_v47 = vpop.f32.mrb[8].mxu0 }
 0x2fd   :  { %v2517_v48 = vpop.f32.mrb[9].mxu0  ;;  %v810_v54 = vadd.f32 %v809_v47, %v3039_v37 }
 0x2fe   :  { %v2245_v48 = vld [vmem:[%s3348_s0 + $0x60] sm:$0xff] }
 0x303   :  { %v2851_v50 = vpop.eup %2850 }
 0x304   :  { %v732_v51 = vadd.f32 1.0, %v2851_v50  ;;  %v2853_v52 = vpop.eup %2852 }
 0x305   :  { %v739_v53 = vadd.f32 1.0, %v2853_v52 }
 0x306   :  { %2854 = vrcp.f32 %v732_v51 }
 0x307   :  { %2856 = vrcp.f32 %v739_v53  ;;  %v2246_v53 = vld [vmem:[%s3348_s0 + $0x68] sm:$0xff] }
 0x310   :  { %v2855_v55 = vpop.eup %2854 }
 0x311   :  { %v813_v58 = vmul.f32 %v2855_v55, %v810_v54  ;;  %v2857_v60 = vpop.eup %2856 }
 0x312   :  { %v816_v61 = vsub.f32 1.0, %v2857_v60  ;;  %v818_v1 = vmul.f32 %v2857_v60, %v566_v33  ;;  %v2231_v33 = vld [vmem:[%s3348_s0 + $0x58] sm:$0xff] }
 0x313   :  { %v814_v59 = vadd.f32 %v2215_v56, %v813_v58 }
 0x315   :  { %2858 = vtanh.f32 %v814_v59 }
 0x31f   :  { %v2859_v62 = vpop.eup %2858 }
 0x320   :  { %v817_v63 = vmul.f32 %v2859_v62, %v816_v61 }
 0x322   :  { %v819_v2 = vadd.f32 %v818_v1, %v817_v63 }
 0x324   :  { %v822_v3 = vmul.f32 %v819_v2, %v3048_v49  ;;  %820 = vst.msk [vmem:[#allocation2] sm:$0xff] %vm25_vm0, %v819_v2 }
 0x326   :  { %v823_v6 = vsel %vm25_vm0, %v822_v3, 0.0 }
 0x327   :  { %824 = vadd.xlane.f32.xlu1 %v823_v6 }
 0x32b   :  { %v833_v7 = vld [vmem:[#allocation2] sm:$0xff] }
 0x32c   :  { %2527 = vmatmul.mubr.msk.f32.vlgmr.msra.gmra.mrb[8].mxu1 %vm25_vm0, %v833_v7  ;;  %2538 = vmatmul.mubr.msk.f32.vlgmr.msra.gmra.mrb[10].mxu0 %vm25_vm0, %v833_v7 }
 0x32d   :  { %2751 = vmatpush3.bf16.msra.mxu1 %v2996_v17  ;;  %2548 = vmatprep.mubr.msk.f32.mxu1 %vm2911_vm1, %v2912_v4 }
 0x32e   :  { %2752 = vmatprep.subr.bf16.mxu1 %v2910_v0  ;;  %2757 = vmatpush3.bf16.msra.mxu0 %v2955_v5 }
 0x32f   :  { %2758 = vmatprep.subr.bf16.mxu0 %v2910_v0  ;;  %2559 = vmatprep.mubr.msk.f32.mxu0 %vm2911_vm1, %v2912_v4 }
 0x331   :  { %2754 = vmatpush3.bf16.msra.mxu1 %v3009_v21 }
 0x332   :  { %2761 = vmatprep.subr.bf16.mxu1 %v2910_v0  ;;  %2760 = vmatpush3.bf16.msra.mxu0 %v2980_v12 }
 0x333   :  { %2767 = vmatprep.subr.bf16.mxu0 %v2910_v0 }
 0x334   :  { %2549 = vmatmul.mubr.msk.f32.vlgmr.msra.gmra.mrb[10].mxu1 %vm25_vm0, %v833_v7 }
 0x335   :  { %2763 = vmatpush3.bf16.msra.mxu1 %v2982_v13  ;;  %2570 = vmatprep.mubr.msk.f32.mxu1 %vm2911_vm1, %v2912_v4 }
 0x336   :  { %2764 = vmatprep.subr.bf16.mxu1 %v2910_v0 }
 0x339   :  { %2766 = vmatpush3.bf16.msra.mxu1 %v2992_v16 }
 0x33a   :  { %2773 = vmatprep.subr.bf16.mxu1 %v2910_v0 }
 0x3b4   :  { %v825_v8 = vpop.xlane.xlu1 %824 }
 0x3b5   :  { %v830_v9 = vrot.slane %v825_v8, %v3074_v57 }
 0x3b7   :  { %832 = vst.msk [vmem:[%s3351_s5 + $0x2] sm:$0x1] %vm297_vm2, %v830_v9 }
 0x3ff   :  { %v907_v11 = vpop.f32.mrb[8].mxu1  ;;  %v981_v14 = vpop.f32.mrb[10].mxu0 }
 0x400   :  { %v995_v15 = vadd.f32 %v2229_v10, %v907_v11  ;;  %v2528_v19 = vpop.f32.mrb[9].mxu1  ;;  %v2539_v20 = vpop.f32.mrb[11].mxu0  ;;  %v1002_v23 = vadd.f32 %v2230_v18, %v981_v14 }
 0x402   :  { %v2232_v22 = vmul.f32 -1.442695, %v995_v15  ;;  %v2233_v24 = vmul.f32 -1.442695, %v1002_v23 }
 0x404   :  { %2860 = vpow2.f32 %v2232_v22 }
 0x405   :  { %2862 = vpow2.f32 %v2233_v24 }
 0x407   :  { %v1076_v25 = vpop.f32.mrb[10].mxu1 }
 0x408   :  { %v2550_v26 = vpop.f32.mrb[11].mxu1  ;;  %v1077_v31 = vadd.f32 %v1076_v25, %v3039_v37 }
 0x40e   :  { %v2861_v27 = vpop.eup %2860 }
 0x40f   :  { %v999_v28 = vadd.f32 1.0, %v2861_v27  ;;  %v2863_v29 = vpop.eup %2862 }
 0x410   :  { %v1006_v30 = vadd.f32 1.0, %v2863_v29 }
 0x411   :  { %2864 = vrcp.f32 %v999_v28 }
 0x412   :  { %2866 = vrcp.f32 %v1006_v30 }
 0x41b   :  { %v2865_v32 = vpop.eup %2864 }
 0x41c   :  { %v1080_v34 = vmul.f32 %v2865_v32, %v1077_v31  ;;  %v2867_v36 = vpop.eup %2866 }
 0x41d   :  { %v1083_v38 = vsub.f32 1.0, %v2867_v36  ;;  %v1085_v41 = vmul.f32 %v2867_v36, %v833_v7  ;;  %v2247_v7 = vld [vmem:[%s3348_s0 + $0x70] sm:$0xff] }
 0x41e   :  { %v1081_v35 = vadd.f32 %v2231_v33, %v1080_v34 }
 0x420   :  { %2868 = vtanh.f32 %v1081_v35 }
 0x42a   :  { %v2869_v39 = vpop.eup %2868 }
 0x42b   :  { %v1084_v40 = vmul.f32 %v2869_v39, %v1083_v38 }
 0x42d   :  { %v1086_v42 = vadd.f32 %v1085_v41, %v1084_v40 }
 0x42f   :  { %v1089_v43 = vmul.f32 %v1086_v42, %v3048_v49  ;;  %1087 = vst.msk [vmem:[#allocation2] sm:$0xff] %vm25_vm0, %v1086_v42  ;;  %v2263_v42 = vld [vmem:[%s3348_s0 + $0x88] sm:$0xff] }
 0x431   :  { %v1090_v44 = vsel %vm25_vm0, %v1089_v43, 0.0 }
 0x432   :  { %1091 = vadd.xlane.f32.xlu1 %v1090_v44 }
 0x436   :  { %v1100_v45 = vld [vmem:[#allocation2] sm:$0xff] }
 0x437   :  { %2560 = vmatmul.mubr.msk.f32.vlgmr.msra.gmra.mrb[12].mxu0 %vm25_vm0, %v1100_v45  ;;  %2571 = vmatmul.mubr.msk.f32.vlgmr.msra.gmra.mrb[12].mxu1 %vm25_vm0, %v1100_v45 }
 0x438   :  { %2769 = vmatpush3.bf16.msra.mxu0 %v2996_v17  ;;  %2581 = vmatprep.mubr.msk.f32.mxu0 %vm2911_vm1, %v2912_v4 }
 0x439   :  { %2770 = vmatprep.subr.bf16.mxu0 %v2910_v0  ;;  %2775 = vmatpush3.bf16.msra.mxu1 %v2955_v5 }
 0x43a   :  { %2776 = vmatprep.subr.bf16.mxu1 %v2910_v0  ;;  %2592 = vmatprep.mubr.msk.f32.mxu1 %vm2911_vm1, %v2912_v4 }
 0x43c   :  { %2772 = vmatpush3.bf16.msra.mxu0 %v3009_v21 }
 0x43d   :  { %2779 = vmatprep.subr.bf16.mxu0 %v2910_v0  ;;  %2778 = vmatpush3.bf16.msra.mxu1 %v2980_v12 }
 0x43e   :  { %2785 = vmatprep.subr.bf16.mxu1 %v2910_v0 }
 0x43f   :  { %2582 = vmatmul.mubr.msk.f32.vlgmr.msra.gmra.mrb[14].mxu0 %vm25_vm0, %v1100_v45 }
 0x440   :  { %2781 = vmatpush3.bf16.msra.mxu0 %v2982_v13  ;;  %2603 = vmatprep.mubr.msk.f32.mxu0 %vm2911_vm1, %v2912_v4 }
 0x441   :  { %2782 = vmatprep.subr.bf16.mxu0 %v2910_v0 }
 0x444   :  { %2784 = vmatpush3.bf16.msra.mxu0 %v2992_v16 }
 0x445   :  { %2791 = vmatprep.subr.bf16.mxu0 %v2910_v0 }
 0x4bf   :  { %v1092_v46 = vpop.xlane.xlu1 %1091 }
 0x4c0   :  { %v1097_v47 = vrot.slane %v1092_v46, %v3074_v57 }
 0x4c2   :  { %1099 = vst.msk [vmem:[%s3351_s5 + $0x3] sm:$0x1] %vm297_vm2, %v1097_v47 }
 0x50a   :  { %v1174_v50 = vpop.f32.mrb[12].mxu0  ;;  %v1248_v51 = vpop.f32.mrb[12].mxu1 }
 0x50b   :  { %v1262_v52 = vadd.f32 %v2245_v48, %v1174_v50  ;;  %v2561_v54 = vpop.f32.mrb[13].mxu0  ;;  %v2572_v55 = vpop.f32.mrb[13].mxu1  ;;  %v1269_v58 = vadd.f32 %v2246_v53, %v1248_v51 }
 0x50c   :  { %v1903_v55 = vld [vmem:[%s3346_s2 + $0x8] sm:$0xff] }
 0x50d   :  { %v2248_v56 = vmul.f32 -1.442695, %v1262_v52  ;;  %v2249_v59 = vmul.f32 -1.442695, %v1269_v58 }
 0x50f   :  { %2870 = vpow2.f32 %v2248_v56  ;;  %v1905_v56 = vld [vmem:[%s3346_s2 + $0x18] sm:$0xff] }
 0x510   :  { %2872 = vpow2.f32 %v2249_v59  ;;  %v2286_v59 = vld [vmem:[%s3346_s2 + $0x30] sm:$0xff] }
 0x512   :  { %v1343_v60 = vpop.f32.mrb[14].mxu0 }
 0x513   :  { %v2583_v61 = vpop.f32.mrb[15].mxu0  ;;  %v1344_v3 = vadd.f32 %v1343_v60, %v3039_v37  ;;  %v2287_v60 = vld [vmem:[%s3346_s2 + $0x38] sm:$0xff] }
 0x514   :  { %v2819_v61 = vpack.c.bf16 %v2287_v60, %v2286_v59  ;;  %v2295_v59 = vld [vmem:[%s3348_s0 + $0xb8] sm:$0xff] }
 0x519   :  { %v2871_v62 = vpop.eup %2870 }
 0x51a   :  { %v1266_v63 = vadd.f32 1.0, %v2871_v62  ;;  %v2873_v1 = vpop.eup %2872 }
 0x51b   :  { %v1273_v2 = vadd.f32 1.0, %v2873_v1  ;;  %v2277_v1 = vld [vmem:[%s3348_s0 + $0x90] sm:$0xff] }
 0x51c   :  { %2874 = vrcp.f32 %v1266_v63 }
 0x51d   :  { %2876 = vrcp.f32 %v1273_v2 }
 0x526   :  { %v2875_v6 = vpop.eup %2874 }
 0x527   :  { %v1347_v8 = vmul.f32 %v2875_v6, %v1344_v3  ;;  %v2877_v10 = vpop.eup %2876 }
 0x528   :  { %v1350_v11 = vsub.f32 1.0, %v2877_v10  ;;  %v1352_v18 = vmul.f32 %v2877_v10, %v1100_v45 }
 0x529   :  { %v1348_v9 = vadd.f32 %v2247_v7, %v1347_v8  ;;  %v2278_v7 = vld [vmem:[%s3348_s0 + $0x98] sm:$0xff] }
 0x52b   :  { %2878 = vtanh.f32 %v1348_v9 }
 0x535   :  { %v2879_v14 = vpop.eup %2878 }
 0x536   :  { %v1351_v15 = vmul.f32 %v2879_v14, %v1350_v11 }
 0x538   :  { %v1353_v19 = vadd.f32 %v1352_v18, %v1351_v15 }
 0x53a   :  { %v1356_v20 = vmul.f32 %v1353_v19, %v3048_v49  ;;  %1354 = vst.msk [vmem:[#allocation2] sm:$0xff] %vm25_vm0, %v1353_v19 }
 0x53c   :  { %v1357_v22 = vsel %vm25_vm0, %v1356_v20, 0.0 }
 0x53d   :  { %1358 = vadd.xlane.f32.xlu0 %v1357_v22 }
 0x541   :  { %v1367_v23 = vld [vmem:[#allocation2] sm:$0xff] }
 0x542   :  { %2593 = vmatmul.mubr.msk.f32.vlgmr.msra.gmra.mrb[14].mxu1 %vm25_vm0, %v1367_v23  ;;  %2604 = vmatmul.mubr.msk.f32.vlgmr.msra.gmra.mrb[16].mxu0 %vm25_vm0, %v1367_v23 }
 0x543   :  { %2787 = vmatpush3.bf16.msra.mxu1 %v2996_v17  ;;  %2614 = vmatprep.mubr.msk.f32.mxu1 %vm2911_vm1, %v2912_v4 }
 0x544   :  { %2788 = vmatprep.subr.bf16.mxu1 %v2910_v0  ;;  %2793 = vmatpush3.bf16.msra.mxu0 %v2955_v5 }
 0x545   :  { %2794 = vmatprep.subr.bf16.mxu0 %v2910_v0  ;;  %2625 = vmatprep.mubr.msk.f32.mxu0 %vm2911_vm1, %v2912_v4 }
 0x547   :  { %2790 = vmatpush3.bf16.msra.mxu1 %v3009_v21 }
 0x548   :  { %2797 = vmatprep.subr.bf16.mxu1 %v2910_v0  ;;  %2796 = vmatpush3.bf16.msra.mxu0 %v2980_v12  ;;  %v2261_v12 = vld [vmem:[%s3348_s0 + $0x78] sm:$0xff] }
 0x549   :  { %2803 = vmatprep.subr.bf16.mxu0 %v2910_v0 }
 0x54a   :  { %2615 = vmatmul.mubr.msk.f32.vlgmr.msra.gmra.mrb[16].mxu1 %vm25_vm0, %v1367_v23 }
 0x54b   :  { %2799 = vmatpush3.bf16.msra.mxu1 %v2982_v13  ;;  %2636 = vmatprep.mubr.msk.f32.mxu1 %vm2911_vm1, %v2912_v4 }
 0x54c   :  { %2800 = vmatprep.subr.bf16.mxu1 %v2910_v0 }
 0x54f   :  { %2802 = vmatpush3.bf16.msra.mxu1 %v2992_v16  ;;  %v2262_v16 = vld [vmem:[%s3348_s0 + $0x80] sm:$0xff] }
 0x550   :  { %2809 = vmatprep.subr.bf16.mxu1 %v2910_v0 }
 0x5ca   :  { %v1359_v5 = vpop.xlane.xlu0 %1358 }
 0x5cb   :  { %v1364_v24 = vrot.slane %v1359_v5, %v3074_v57 }
 0x5cd   :  { %1366 = vst.msk [vmem:[%s3351_s5 + $0x4] sm:$0x1] %vm297_vm2, %v1364_v24 }
 0x615   :  { %v1441_v25 = vpop.f32.mrb[14].mxu1  ;;  %v1515_v26 = vpop.f32.mrb[16].mxu0 }
 0x616   :  { %v1529_v27 = vadd.f32 %v2261_v12, %v1441_v25  ;;  %v2594_v28 = vpop.f32.mrb[15].mxu1  ;;  %v2605_v29 = vpop.f32.mrb[17].mxu0  ;;  %v1536_v31 = vadd.f32 %v2262_v16, %v1515_v26  ;;  %v2279_v12 = vld [vmem:[%s3348_s0 + $0xa0] sm:$0xff] }
 0x618   :  { %v2264_v30 = vmul.f32 -1.442695, %v1529_v27  ;;  %v2265_v32 = vmul.f32 -1.442695, %v1536_v31 }
 0x61a   :  { %2880 = vpow2.f32 %v2264_v30 }
 0x61b   :  { %2882 = vpow2.f32 %v2265_v32 }
 0x61d   :  { %v1610_v33 = vpop.f32.mrb[16].mxu1 }
 0x61e   :  { %v2616_v34 = vpop.f32.mrb[17].mxu1  ;;  %v1611_v40 = vadd.f32 %v1610_v33, %v3039_v37  ;;  %v2289_v33 = vld [vmem:[%s3346_s2 + $0x40] sm:$0xff] }
 0x61f   :  { %v2290_v34 = vld [vmem:[%s3346_s2 + $0x48] sm:$0xff] }
 0x624   :  { %v2881_v35 = vpop.eup %2880 }
 0x625   :  { %v1533_v36 = vadd.f32 1.0, %v2881_v35  ;;  %v2883_v38 = vpop.eup %2882  ;;  %v2822_v35 = vpack.c.bf16 %v2290_v34, %v2289_v33 }
 0x626   :  { %v1540_v39 = vadd.f32 1.0, %v2883_v38  ;;  %v2292_v38 = vld [vmem:[%s3346_s2 + $0x58] sm:$0xff] }
 0x627   :  { %2884 = vrcp.f32 %v1533_v36  ;;  %v2291_v36 = vld [vmem:[%s3346_s2 + $0x50] sm:$0xff] }
 0x628   :  { %2886 = vrcp.f32 %v1540_v39 }
 0x631   :  { %v2885_v41 = vpop.eup %2884 }
 0x632   :  { %v1614_v43 = vmul.f32 %v2885_v41, %v1611_v40  ;;  %v2887_v45 = vpop.eup %2886  ;;  %v2825_v40 = vpack.c.bf16 %v2292_v38, %v2291_v36 }
 0x633   :  { %v1617_v46 = vsub.f32 1.0, %v2887_v45  ;;  %v1619_v50 = vmul.f32 %v2887_v45, %v1367_v23 }
 0x634   :  { %v1615_v44 = vadd.f32 %v2263_v42, %v1614_v43  ;;  %v2293_v43 = vld [vmem:[%s3348_s0 + $0xa8] sm:$0xff] }
 0x636   :  { %2888 = vtanh.f32 %v1615_v44 }
 0x640   :  { %v2889_v47 = vpop.eup %2888 }
 0x641   :  { %v1618_v48 = vmul.f32 %v2889_v47, %v1617_v46 }
 0x643   :  { %v1620_v51 = vadd.f32 %v1619_v50, %v1618_v48 }
 0x645   :  { %v1623_v52 = vmul.f32 %v1620_v51, %v3048_v49  ;;  %1621 = vst.msk [vmem:[#allocation2] sm:$0xff] %vm25_vm0, %v1620_v51 }
 0x647   :  { %v1624_v53 = vsel %vm25_vm0, %v1623_v52, 0.0 }
 0x648   :  { %1625 = vadd.xlane.f32.xlu1 %v1624_v53 }
 0x64c   :  { %v1634_v54 = vld [vmem:[#allocation2] sm:$0xff] }
 0x64d   :  { %2626 = vmatmul.mubr.msk.f32.vlgmr.msra.gmra.mrb[18].mxu0 %vm25_vm0, %v1634_v54  ;;  %2637 = vmatmul.mubr.msk.f32.vlgmr.msra.gmra.mrb[18].mxu1 %vm25_vm0, %v1634_v54 }
 0x64e   :  { %2805 = vmatpush3.bf16.msra.mxu0 %v2996_v17  ;;  %2647 = vmatprep.mubr.msk.f32.mxu0 %vm2911_vm1, %v2912_v4  ;;  %v1902_v17 = vld [vmem:[%s3346_s2] sm:$0xff] }
 0x64f   :  { %2806 = vmatprep.subr.bf16.mxu0 %v2910_v0  ;;  %2658 = vmatprep.mubr.msk.f32.mxu1 %vm2911_vm1, %v2912_v4 }
 0x652   :  { %2808 = vmatpush3.bf16.msra.mxu0 %v3009_v21  ;;  %v2810_v21 = vpack.c.bf16 %v1903_v55, %v1902_v17 }
 0x653   :  { %2815 = vmatprep.subr.bf16.mxu0 %v2910_v0 }
 0x654   :  { %2811 = vmatpush3.bf16.msra.mxu1 %v2810_v21  ;;  %v2077_v21 = vld [vmem:[%s3349_s3] sm:$0xff] }
 0x655   :  { %2648 = vmatmul.mubr.msk.f32.vlgmr.msra.gmra.mrb[20].mxu0 %vm25_vm0, %v1634_v54  ;;  %2812 = vmatprep.subr.bf16.mxu1 %v2910_v0 }
 0x656   :  { %2817 = vmatpush3.bf16.msra.mxu0 %v2982_v13  ;;  %2669 = vmatprep.mubr.msk.f32.mxu0 %vm2911_vm1, %v2912_v4  ;;  %v1904_v13 = vld [vmem:[%s3346_s2 + $0x10] sm:$0xff] }
 0x657   :  { %2818 = vmatprep.subr.bf16.mxu0 %v2910_v0  ;;  %v2813_v58 = vpack.c.bf16 %v1905_v56, %v1904_v13 }
 0x659   :  { %2814 = vmatpush3.bf16.msra.mxu1 %v2813_v58 }
 0x65a   :  { %2820 = vmatpush3.bf16.msra.mxu0 %v2819_v61  ;;  %2821 = vmatprep.subr.bf16.mxu1 %v2910_v0 }
 0x6d5   :  { %v1626_v62 = vpop.xlane.xlu1 %1625 }
 0x6d6   :  { %v1631_v63 = vrot.slane %v1626_v62, %v3074_v57 }
 0x6d8   :  { %1633 = vst.msk [vmem:[%s3351_s5 + $0x5] sm:$0x1] %vm297_vm2, %v1631_v63 }
 0x720   :  { %v1708_v2 = vpop.f32.mrb[18].mxu0  ;;  %v1782_v3 = vpop.f32.mrb[18].mxu1 }
 0x721   :  { %v1796_v6 = vadd.f32 %v2277_v1, %v1708_v2  ;;  %v2627_v8 = vpop.f32.mrb[19].mxu0  ;;  %v2638_v9 = vpop.f32.mrb[19].mxu1  ;;  %v1803_v11 = vadd.f32 %v2278_v7, %v1782_v3 }
 0x723   :  { %v2280_v10 = vmul.f32 -1.442695, %v1796_v6  ;;  %v2281_v14 = vmul.f32 -1.442695, %v1803_v11 }
 0x725   :  { %2890 = vpow2.f32 %v2280_v10 }
 0x726   :  { %2892 = vpow2.f32 %v2281_v14 }
 0x728   :  { %v1877_v15 = vpop.f32.mrb[20].mxu0 }
 0x729   :  { %v2649_v18 = vpop.f32.mrb[21].mxu0  ;;  %v1878_v5 = vadd.f32 %v1877_v15, %v3039_v37 }
 0x72f   :  { %v2891_v19 = vpop.eup %2890 }
 0x730   :  { %v1800_v20 = vadd.f32 1.0, %v2891_v19  ;;  %v2893_v22 = vpop.eup %2892 }
 0x731   :  { %v1807_v23 = vadd.f32 1.0, %v2893_v22 }
 0x732   :  { %2894 = vrcp.f32 %v1800_v20 }
 0x733   :  { %2896 = vrcp.f32 %v1807_v23 }
 0x73c   :  { %v2895_v24 = vpop.eup %2894 }
 0x73d   :  { %v1881_v25 = vmul.f32 %v2895_v24, %v1878_v5  ;;  %v2897_v27 = vpop.eup %2896 }
 0x73e   :  { %v1884_v16 = vsub.f32 1.0, %v2897_v27  ;;  %v1886_v30 = vmul.f32 %v2897_v27, %v1634_v54 }
 0x73f   :  { %v1882_v26 = vadd.f32 %v2279_v12, %v1881_v25 }
 0x741   :  { %2898 = vtanh.f32 %v1882_v26 }
 0x74b   :  { %v2899_v28 = vpop.eup %2898 }
 0x74c   :  { %v1885_v29 = vmul.f32 %v2899_v28, %v1884_v16 }
 0x74e   :  { %v1887_v31 = vadd.f32 %v1886_v30, %v1885_v29 }
 0x750   :  { %v1890_v32 = vmul.f32 %v1887_v31, %v3048_v49  ;;  %1888 = vst.msk [vmem:[#allocation2] sm:$0xff] %vm25_vm0, %v1887_v31 }
 0x752   :  { %v1891_v37 = vsel %vm25_vm0, %v1890_v32, 0.0 }
 0x753   :  { %1892 = vadd.xlane.f32.xlu0 %v1891_v37 }
 0x757   :  { %v1901_v39 = vld [vmem:[#allocation2] sm:$0xff] }
 0x758   :  { %2659 = vmatmul.mubr.msk.f32.vlgmr.msra.gmra.mrb[20].mxu1 %vm25_vm0, %v1901_v39  ;;  %2670 = vmatmul.mubr.msk.f32.vlgmr.msra.gmra.mrb[22].mxu0 %vm25_vm0, %v1901_v39 }
 0x759   :  { %2823 = vmatpush3.bf16.msra.mxu1 %v2822_v35  ;;  %2680 = vmatprep.mubr.msk.f32.mxu1 %vm2911_vm1, %v2912_v4 }
 0x75a   :  { %2824 = vmatprep.subr.bf16.mxu1 %v2910_v0  ;;  %v2294_v0 = vld [vmem:[%s3348_s0 + $0xb0] sm:$0xff] }
 0x75d   :  { %2826 = vmatpush3.bf16.msra.mxu1 %v2825_v40 }
 0x760   :  { %2681 = vmatmul.mubr.msk.f32.vlgmr.msra.gmra.mrb[22].mxu1 %vm25_vm0, %v1901_v39 }
 0x7e0   :  { %v1893_v41 = vpop.xlane.xlu0 %1892 }
 0x7e1   :  { %v1898_v42 = vrot.slane %v1893_v41, %v3074_v57 }
 0x7e3   :  { %1900 = vst.msk [vmem:[%s3351_s5 + $0x6] sm:$0x1] %vm297_vm2, %v1898_v42 }
 0x82b   :  { %v1975_v44 = vpop.f32.mrb[20].mxu1  ;;  %v2049_v45 = vpop.f32.mrb[22].mxu0 }
 0x82c   :  { %v2063_v4 = vadd.f32 %v2293_v43, %v1975_v44  ;;  %v2660_v46 = vpop.f32.mrb[21].mxu1  ;;  %v2671_v47 = vpop.f32.mrb[23].mxu0  ;;  %v2070_v50 = vadd.f32 %v2294_v0, %v2049_v45 }
 0x82e   :  { %v2296_v48 = vmul.f32 -1.442695, %v2063_v4  ;;  %v2297_v51 = vmul.f32 -1.442695, %v2070_v50 }
 0x830   :  { %2900 = vpow2.f32 %v2296_v48 }
 0x831   :  { %2902 = vpow2.f32 %v2297_v51 }
 0x833   :  { %v2144_v52 = vpop.f32.mrb[22].mxu1 }
 0x834   :  { %v2682_v53 = vpop.f32.mrb[23].mxu1  ;;  %v2145_v56 = vadd.f32 %v2144_v52, %v2077_v21 }
 0x83a   :  { %v2901_v54 = vpop.eup %2900 }
 0x83b   :  { %v2067_v17 = vadd.f32 1.0, %v2901_v54  ;;  %v2903_v55 = vpop.eup %2902 }
 0x83c   :  { %v2074_v13 = vadd.f32 1.0, %v2903_v55 }
 0x83d   :  { %2904 = vrcp.f32 %v2067_v17 }
 0x83e   :  { %2906 = vrcp.f32 %v2074_v13 }
 0x847   :  { %v2905_v58 = vpop.eup %2904 }
 0x848   :  { %v2148_v60 = vmul.f32 %v2905_v58, %v2145_v56  ;;  %v2907_v62 = vpop.eup %2906 }
 0x849   :  { %v2151_v63 = vsub.f32 1.0, %v2907_v62  ;;  %v2153_v3 = vmul.f32 %v2907_v62, %v1901_v39 }
 0x84a   :  { %v2149_v61 = vadd.f32 %v2295_v59, %v2148_v60 }
 0x84c   :  { %2908 = vtanh.f32 %v2149_v61 }
 0x856   :  { %v2909_v1 = vpop.eup %2908 }
 0x857   :  { %v2152_v2 = vmul.f32 %v2909_v1, %v2151_v63 }
 0x859   :  { %v2154_v6 = vadd.f32 %v2153_v3, %v2152_v2 }
 0x85b   :  { %v2157_v7 = vmul.f32 %v2154_v6, %v3048_v49  ;;  %2155 = vst.msk [vmem:[#allocation2] sm:$0xff] %vm25_vm0, %v2154_v6 }
 0x85d   :  { %v2158_v8 = vsel %vm25_vm0, %v2157_v7, 0.0 }
 0x85e   :  { %2159 = vadd.xlane.f32.xlu1 %v2158_v8 }
 0x8eb   :  { %v2160_v9 = vpop.xlane.xlu1 %2159 }
 0x8ec   :  { %v2165_v10 = vrot.slane %v2160_v9, %v3074_v57 }
 0x8ee   :  { %2167 = vst.msk [vmem:[%s3351_s5 + $0x7] sm:$0x1] %vm297_vm2, %v2165_v10 }

</bundles_post_ra>
